<compile_context>
chip_gen: v5e
topology: v5e:2x2
jax: 0.10.0
libtpu: 0.0.40
codegen_flags: <defaults>
</compile_context>

<pallas_src>
import jax
import jax.numpy as jnp
import numpy as np
from jax.experimental import pallas as pl
from jax.experimental.pallas import tpu as pltpu

F32 = jnp.float32
MATMUL_DTYPE = jnp.bfloat16   # set to jnp.float32 for exact-f32 matmuls (debugging)
NEG_BIG = -1e30               # bias for padded vocab columns (killed by log-softmax)


def _rup(n, m):
    return ((n + m - 1) // m) * m


def _pad2(x, shape):
    return jnp.pad(x, [(0, t - s) for s, t in zip(x.shape, shape)])


# ------------------------------------------------------------------------------------------
# Kernel: the whole T-step decode.  grid=(T,): weights stay VMEM-resident (constant block
# index), h/c carried in VMEM scratch, per-step embedding / log-prob rows streamed.
# ------------------------------------------------------------------------------------------
def _decoder_decode_kernel(
    embed_ref,                    # (1, Bp, Mp)   f32   this step's embedding rows
    h0_ref, c0_ref,               # (Bp, Dp)      f32   initial recurrent state
    v_ref,                        # (Bp, L, Ep)   f32   encoder output (attention values)
    enc_proj_ref,                 # (Bp, L, Ap)   f32   precomputed V @ W_enc^T
    w_h_ref,                      # (Dp, Ap+4Dp)  bf16  [W_dec_attn^T | gate-blocked W_hh1^T]
    w_emb_ref,                    # (Mp, 4Dp)     bf16  (W_ih1 @ W_concat_embed)^T
    w_ctx_ref,                    # (Ep, 4Dp)     bf16  (W_ih1 @ W_concat_ctx)^T
    b1_ref,                       # (1, 4Dp)      f32   W_ih1 @ b_concat + b_ih1 + b_hh1
    w_full_ref,                   # (1, Ap)       f32
    w2_ref, b2_ref,               # (Dp, 4Dp) bf16, (1, 4Dp) f32  (W_ih2+W_hh2, b_ih2+b_hh2)
    w_out_ref, b_out_ref,         # (Dp, Cp)  bf16, (1, Cp)  f32
    logp_ref,                     # (1, Bp, Cp)   f32   out: this step's log-probs
    h_out_ref, c_out_ref,         # (Bp, Dp)      f32   out: final recurrent state
    h_sc, c_sc,                   # (Bp, Dp)      f32   scratch: recurrent-state carry
):
    t = pl.program_id(0)

    @pl.when(t == 0)
    def _():
        h_sc[...] = h0_ref[...]
        c_sc[...] = c0_ref[...]

    h = h_sc[...]
    c = c_sc[...]
    mm = w_h_ref.dtype
    Dp = h.shape[-1]
    Ap = enc_proj_ref.shape[-1]

    # ---- off-critical-path matmuls issue first (only context@B waits behind the softmax) ----
    hW = jnp.dot(h.astype(mm), w_h_ref[...], preferred_element_type=F32)          # (Bp, Ap+4Dp)
    g_emb = jnp.dot(embed_ref[0].astype(mm), w_emb_ref[...],
                    preferred_element_type=F32)                                    # (Bp, 4Dp)
    attn1, gates_h = hW[:, :Ap], hW[:, Ap:]                                        # lane-aligned

    # ---- attention (encoder projection precomputed; L=16 reductions are XLU slack-filler) ----
    s = jnp.tanh(attn1[:, None, :] + enc_proj_ref[...])                            # (Bp, L, Ap)
    scores = jnp.sum(s * w_full_ref[...][None], axis=-1)                           # (Bp, L)
    m = jnp.max(scores, axis=-1, keepdims=True)
    e = jnp.exp(scores - m)
    # approx reciprocal: alpha sums to 1 only to ~1e-3 (EUP slot, fine for inference).
    alpha = e * pl.reciprocal(jnp.sum(e, axis=-1, keepdims=True), approx=True)
    context = jnp.sum(alpha[:, :, None] * v_ref[...], axis=1)                      # (Bp, Ep)

    # ---- LSTM cell 1 (concat-Linear folded into the input weights) ----
    gates1 = (g_emb + gates_h + b1_ref[...]
              + jnp.dot(context.astype(mm), w_ctx_ref[...], preferred_element_type=F32))

    def lstm_gates(gates, c_prev):                      # PyTorch gate order i, f, g, o
        i = jax.nn.sigmoid(gates[:, 0 * Dp:1 * Dp])
        f = jax.nn.sigmoid(gates[:, 1 * Dp:2 * Dp])
        g = jnp.tanh(gates[:, 2 * Dp:3 * Dp])
        o = jax.nn.sigmoid(gates[:, 3 * Dp:4 * Dp])
        c_new = f * c_prev + i * g
        return o * jnp.tanh(c_new), c_new

    h1, c1 = lstm_gates(gates1, c)

    # dropout(p=0.1) between the LSTMs is identity at inference.
    # ---- LSTM cell 2: input == hidden == h1  =>  one matmul with W2 = W_ih2 + W_hh2 ----
    gates2 = jnp.dot(h1.astype(mm), w2_ref[...], preferred_element_type=F32) + b2_ref[...]
    h2, c2 = lstm_gates(gates2, c1)

    # ---- vocab projection + log-softmax (padded classes biased to -1e30) ----
    logits = jnp.dot(h2.astype(mm), w_out_ref[...], preferred_element_type=F32) + b_out_ref[...]
    lm = jnp.max(logits, axis=-1, keepdims=True)
    lse = lm + jnp.log(jnp.sum(jnp.exp(logits - lm), axis=-1, keepdims=True))
    logp_ref[0] = logits - lse

    # carry state to the next step + final writeback (constant output block index => resident)
    h_sc[...] = h2
    c_sc[...] = c2
    h_out_ref[...] = h2
    c_out_ref[...] = c2


# ------------------------------------------------------------------------------------------
# Wrapper-side weight preparation (done ONCE, outside the decode loop)
# ------------------------------------------------------------------------------------------
def prepare_decoder_params(params):
    """Pre-transpose / fuse / fold / pad / cast weights. PyTorch (out,in) -> padded (in,out)."""
    n_class, dec = params["w_out"].shape
    attn = params["w_dec_attn"].shape[0]
    enc = params["w_enc_attn"].shape[1]
    emb = params["embedding"].shape[1]

    Dp, Ap, Ep, Mp, Cp = (_rup(d, 128) for d in (dec, attn, enc, emb, n_class))
    mm = MATMUL_DTYPE

    # --- attention decoder-side projection fused with the LSTM-1 hidden path: one h-matmul ---
    # W_h = [ W_dec_attn^T | gate-blocked W_hh1^T ] : (Dp, Ap + 4*Dp)
    w_h = jnp.zeros((Dp, Ap + 4 * Dp), F32)
    w_h = w_h.at[:dec, :attn].set(params["w_dec_attn"].T)
    for g in range(4):
        w_h = w_h.at[:dec, Ap + g * Dp: Ap + g * Dp + dec].set(
            params["w_hh1"][g * dec:(g + 1) * dec, :].T)

    w_full_p = _pad2(params["w_full"], (1, Ap))          # f32, used on the VPU

    # --- fold the concat-Linear into the LSTM-1 input path (x only feeds gates1) ---
    wc = params["w_concat"]                               # (dec, emb+enc)
    A = params["w_ih1"] @ wc[:, :emb]                     # (4*dec, emb)
    Bm = params["w_ih1"] @ wc[:, emb:]                    # (4*dec, enc)
    b1_raw = params["w_ih1"] @ params["b_concat"] + params["b_ih1"] + params["b_hh1"]

    w_emb = jnp.zeros((Mp, 4 * Dp), F32)
    w_ctx = jnp.zeros((Ep, 4 * Dp), F32)
    b1 = jnp.zeros((1, 4 * Dp), F32)
    for g in range(4):
        w_emb = w_emb.at[:emb, g * Dp:g * Dp + dec].set(A[g * dec:(g + 1) * dec, :].T)
        w_ctx = w_ctx.at[:enc, g * Dp:g * Dp + dec].set(Bm[g * dec:(g + 1) * dec, :].T)
        b1 = b1.at[0, g * Dp:g * Dp + dec].set(b1_raw[g * dec:(g + 1) * dec])

    # --- LSTM cell 2: x == h1  =>  W2 = W_ih2 + W_hh2, b2 = b_ih2 + b_hh2 ---
    w2_raw = params["w_ih2"] + params["w_hh2"]
    b2_raw = params["b_ih2"] + params["b_hh2"]
    w2 = jnp.zeros((Dp, 4 * Dp), F32)
    b2 = jnp.zeros((1, 4 * Dp), F32)
    for g in range(4):
        w2 = w2.at[:dec, g * Dp:g * Dp + dec].set(w2_raw[g * dec:(g + 1) * dec, :].T)
        b2 = b2.at[0, g * Dp:g * Dp + dec].set(b2_raw[g * dec:(g + 1) * dec])

    # --- output projection; padded vocab lanes get a -1e30 bias so log-softmax ignores them ---
    w_out_p = _pad2(params["w_out"].T, (Dp, Cp)).astype(mm)
    b_out_p = jnp.full((1, Cp), NEG_BIG, F32).at[0, :n_class].set(params["b_out"])

    return {
        "dims": dict(dec=dec, attn=attn, enc=enc, emb=emb, n_class=n_class,
                     Dp=Dp, Ap=Ap, Ep=Ep, Mp=Mp, Cp=Cp),
        "embedding": params["embedding"],                  # raw, gather done as JAX glue
        "w_h": w_h.astype(mm), "w_full": w_full_p,
        "w_emb": w_emb.astype(mm), "w_ctx": w_ctx.astype(mm), "b1": b1,
        "w2": w2.astype(mm), "b2": b2,
        "w_out": w_out_p, "b_out": b_out_p,
    }


def precompute_encoder_attention(params, encoder_out):
    """Loop-invariant encoder projection: enc_attn(V) -> (B, L, attn). Once per utterance."""
    return jnp.einsum("ble,ae->bla", encoder_out, params["w_enc_attn"]).astype(F32)


# ------------------------------------------------------------------------------------------
# Forward wrappers
# ------------------------------------------------------------------------------------------
def _const_spec(shape):
    nd = len(shape)
    return pl.BlockSpec(shape, lambda t, _nd=nd: (0,) * _nd)


def _decode_padded(prep, embed_seq, h_p, c_p, v_p, ep_p):
    d = prep["dims"]
    T, Bp, Mp = embed_seq.shape
    Dp, Ap, Ep, Cp = d["Dp"], d["Ap"], d["Ep"], d["Cp"]
    L = v_p.shape[1]

    in_specs = [
        pl.BlockSpec((1, Bp, Mp), lambda t: (t, 0, 0)),        # embedding rows (streamed)
        _const_spec((Bp, Dp)), _const_spec((Bp, Dp)),          # h0, c0
        _const_spec((Bp, L, Ep)),                              # V          (VMEM-resident)
        _const_spec((Bp, L, Ap)),                              # enc_proj   (VMEM-resident)
        _const_spec(prep["w_h"].shape),
        _const_spec(prep["w_emb"].shape),
        _const_spec(prep["w_ctx"].shape),
        _const_spec(prep["b1"].shape),
        _const_spec(prep["w_full"].shape),
        _const_spec(prep["w2"].shape),
        _const_spec(prep["b2"].shape),
        _const_spec(prep["w_out"].shape),
        _const_spec(prep["b_out"].shape),
    ]
    out_specs = (
        pl.BlockSpec((1, Bp, Cp), lambda t: (t, 0, 0)),        # per-step log-probs
        _const_spec((Bp, Dp)),                                 # final h
        _const_spec((Bp, Dp)),                                 # final c
    )

    return pl.pallas_call(
        _decoder_decode_kernel,
        out_shape=(
            jax.ShapeDtypeStruct((T, Bp, Cp), F32),
            jax.ShapeDtypeStruct((Bp, Dp), F32),
            jax.ShapeDtypeStruct((Bp, Dp), F32),
        ),
        grid_spec=pltpu.PrefetchScalarGridSpec(
            num_scalar_prefetch=0,
            grid=(T,),
            in_specs=in_specs,
            out_specs=out_specs,
            scratch_shapes=[pltpu.VMEM((Bp, Dp), F32), pltpu.VMEM((Bp, Dp), F32)],
        ),
        compiler_params=pltpu.CompilerParams(
            dimension_semantics=("arbitrary",),                # sequential recurrence over t
            vmem_limit_bytes=32 << 20,                         # safe on v7x's 64 MiB per-TC VMEM
        ),
    )(embed_seq, h_p, c_p, v_p, ep_p,
      prep["w_h"], prep["w_emb"], prep["w_ctx"], prep["b1"], prep["w_full"],
      prep["w2"], prep["b2"], prep["w_out"], prep["b_out"])


def decoder_decode(prep, y, encoder_out, enc_proj, hidden_state):
    """Teacher-forced T-step decode in ONE pallas_call (equivalent to T chained
    Decoder.forward calls feeding y[:, t] at step t).
    Returns (log_probs (B, T, n_class), (h, c))."""
    d = prep["dims"]
    h, c = hidden_state
    B, T = y.shape
    Bp = _rup(B, 8)

    embed_all = jnp.take(prep["embedding"], y, axis=0)                       # (B, T, emb)
    embed_seq = jnp.transpose(embed_all, (1, 0, 2))                          # (T, B, emb)
    embed_seq = jnp.pad(embed_seq, [(0, 0), (0, Bp - B), (0, d["Mp"] - d["emb"])])

    # Zero-pad activations to lane-dense shapes; padded FEATURE lanes of h/c stay exactly 0
    # through the recurrence by construction of the padded weights (padded batch rows do not,
    # but they never influence the first B rows and are sliced off below).
    h_p = _pad2(h, (Bp, d["Dp"]))
    c_p = _pad2(c, (Bp, d["Dp"]))
    v_p = jnp.pad(encoder_out, [(0, Bp - B), (0, 0), (0, d["Ep"] - d["enc"])])
    ep_p = jnp.pad(enc_proj, [(0, Bp - B), (0, 0), (0, d["Ap"] - d["attn"])])

    logp_seq, h_new, c_new = _decode_padded(prep, embed_seq, h_p, c_p, v_p, ep_p)
    logp = jnp.transpose(logp_seq[:, :B, :d["n_class"]], (1, 0, 2))          # (B, T, n_class)
    return logp, (h_new[:B, :d["dec"]], c_new[:B, :d["dec"]])


def decoder_forward(prep, y, encoder_out, enc_proj, hidden_state):
    """One decode step — exact semantics of the PyTorch Decoder.forward
    (uses y[:, -1]; returns log-probs (B, 1, n_class) and the new (h, c))."""
    return decoder_decode(prep, y[:, -1:], encoder_out, enc_proj, hidden_state)


# ------------------------------------------------------------------------------------------
# Parameters (PyTorch layout) + plain-JAX references
# ------------------------------------------------------------------------------------------
def init_params(key, n_class, emb_dim, enc_dim, dec_dim, attn_dim):
    ks = iter(jax.random.split(key, 24))

    def lin(out_d, in_d):
        return (jax.random.normal(next(ks), (out_d, in_d), F32) / np.sqrt(in_d)).astype(F32)

    def bias(n):
        return jax.random.normal(next(ks), (n,), F32) * 0.01

    return {
        "embedding": jax.random.normal(next(ks), (n_class, emb_dim), F32) * 0.1,
        "w_dec_attn": lin(attn_dim, dec_dim),
        "w_enc_attn": lin(attn_dim, enc_dim),
        "w_full": lin(1, attn_dim),
        "w_concat": lin(dec_dim, emb_dim + enc_dim),
        "b_concat": bias(dec_dim),
        "w_ih1": lin(4 * dec_dim, dec_dim), "w_hh1": lin(4 * dec_dim, dec_dim),
        "b_ih1": bias(4 * dec_dim), "b_hh1": bias(4 * dec_dim),
        "w_ih2": lin(4 * dec_dim, dec_dim), "w_hh2": lin(4 * dec_dim, dec_dim),
        "b_ih2": bias(4 * dec_dim), "b_hh2": bias(4 * dec_dim),
        "w_out": lin(n_class, dec_dim),
        "b_out": bias(n_class),
    }


def decoder_forward_reference(params, y, encoder_out, hidden_state):
    """Plain-JAX f32 reference mirroring the PyTorch forward (one step)."""
    h, c = hidden_state
    embed_last = jnp.take(params["embedding"], y[:, -1], axis=0)
    attn1 = h @ params["w_dec_attn"].T
    attn2 = jnp.einsum("ble,ae->bla", encoder_out, params["w_enc_attn"])
    scores = jnp.einsum("bla,a->bl", jnp.tanh(attn1[:, None, :] + attn2), params["w_full"][0])
    alpha = jax.nn.softmax(scores, axis=-1)
    context = jnp.einsum("bl,ble->be", alpha, encoder_out)
    x = jnp.concatenate([embed_last, context], axis=-1) @ params["w_concat"].T + params["b_concat"]

    def cell(xt, hp, cp, wih, whh, bih, bhh):
        g = xt @ wih.T + bih + hp @ whh.T + bhh
        D = hp.shape[-1]
        i, f, gg, o = (jax.nn.sigmoid(g[:, :D]), jax.nn.sigmoid(g[:, D:2 * D]),
                       jnp.tanh(g[:, 2 * D:3 * D]), jax.nn.sigmoid(g[:, 3 * D:]))
        cn = f * cp + i * gg
        return o * jnp.tanh(cn), cn

    h1, c1 = cell(x, h, c, params["w_ih1"], params["w_hh1"], params["b_ih1"], params["b_hh1"])
    h2, c2 = cell(h1, h1, c1, params["w_ih2"], params["w_hh2"], params["b_ih2"], params["b_hh2"])
    logits = h2 @ params["w_out"].T + params["b_out"]
    logp = jax.nn.log_softmax(logits, axis=-1)
    return logp[:, None, :], (h2, c2)


def decoder_decode_reference(params, y, encoder_out, hidden_state):
    """T chained single-step forwards (teacher forcing) — reference for the folded kernel."""
    logps, hc = [], hidden_state
    for t in range(y.shape[1]):
        logp, hc = decoder_forward_reference(params, y[:, :t + 1], encoder_out, hc)
        logps.append(logp)
    return jnp.concatenate(logps, axis=1), hc


if __name__ == "__main__":
    B, T = 2, 8
    n_class, emb_dim, enc_dim, dec_dim, attn_dim = 32, 16, 32, 32, 32
    L = 16  # 4x4 encoder spatial positions, flattened

    root = jax.random.PRNGKey(0)
    kp, ky, kv, kh, kc = jax.random.split(root, 5)
    params = init_params(kp, n_class, emb_dim, enc_dim, dec_dim, attn_dim)
    prep = prepare_decoder_params(params)          # one-time weight fuse/fold/transpose/pad/cast

    y = jax.random.randint(ky, (B, T), 0, n_class, dtype=jnp.int32)
    encoder_out = jax.random.normal(kv, (B, L, enc_dim), F32)
    h0 = jax.random.normal(kh, (B, dec_dim), F32)
    c0 = jax.random.normal(kc, (B, dec_dim), F32)

    # Loop-invariant encoder-side attention projection: computed once, reused every step.
    enc_proj = precompute_encoder_attention(params, encoder_out)

    # ---------------- single step: exact Decoder.forward semantics ----------------
    out1, (h1_, c1_) = decoder_forward(prep, y, encoder_out, enc_proj, (h0, c0))
    jax.block_until_ready((out1, h1_, c1_))
    ref1, (rh1, rc1) = decoder_forward_reference(params, y, encoder_out, (h0, c0))
    tol = dict(rtol=5e-2, atol=5e-2)     # bf16 MXU operands vs f32 reference
    np.testing.assert_allclose(np.asarray(out1), np.asarray(ref1), **tol)
    np.testing.assert_allclose(np.asarray(h1_), np.asarray(rh1), **tol)
    np.testing.assert_allclose(np.asarray(c1_), np.asarray(rc1), **tol)
    assert out1.shape == (B, 1, n_class)
    assert h1_.shape == (B, dec_dim) and c1_.shape == (B, dec_dim)

    # ------ folded T-step decode: one pallas_call, resident weights, scratch-carried h/c ------
    out_seq, (hT, cT) = decoder_decode(prep, y, encoder_out, enc_proj, (h0, c0))
    jax.block_until_ready((out_seq, hT, cT))
    ref_seq, (rhT, rcT) = decoder_decode_reference(params, y, encoder_out, (h0, c0))
    # bf16 MXU rounding compounds through the h/c recurrence over T steps -> looser tolerance.
    tol_seq = dict(rtol=1e-1, atol=1e-1)
    np.testing.assert_allclose(np.asarray(out_seq), np.asarray(ref_seq), **tol_seq)
    np.testing.assert_allclose(np.asarray(hT), np.asarray(rhT), **tol_seq)
    np.testing.assert_allclose(np.asarray(cT), np.asarray(rcT), **tol_seq)
    assert out_seq.shape == (B, T, n_class)
    assert hT.shape == (B, dec_dim) and cT.shape == (B, dec_dim)

    print("KERNEL_OK")
</pallas_src>

<mosaic_0001>
module attributes {stable_mosaic.version = 11 : i64} {
  func.func @_decoder_decode_kernel(%arg0: i32, %arg1: memref<1x8x128xf32, #tpu.memory_space<vmem>>, %arg2: memref<8x128xf32, #tpu.memory_space<vmem>>, %arg3: memref<8x128xf32, #tpu.memory_space<vmem>>, %arg4: memref<8x16x128xf32, #tpu.memory_space<vmem>>, %arg5: memref<8x16x128xf32, #tpu.memory_space<vmem>>, %arg6: memref<128x640xbf16, #tpu.memory_space<vmem>>, %arg7: memref<128x512xbf16, #tpu.memory_space<vmem>>, %arg8: memref<128x512xbf16, #tpu.memory_space<vmem>>, %arg9: memref<1x512xf32, #tpu.memory_space<vmem>>, %arg10: memref<1x128xf32, #tpu.memory_space<vmem>>, %arg11: memref<128x512xbf16, #tpu.memory_space<vmem>>, %arg12: memref<1x512xf32, #tpu.memory_space<vmem>>, %arg13: memref<128x128xbf16, #tpu.memory_space<vmem>>, %arg14: memref<1x128xf32, #tpu.memory_space<vmem>>, %arg15: memref<1x8x128xf32, #tpu.memory_space<vmem>>, %arg16: memref<8x128xf32, #tpu.memory_space<vmem>>, %arg17: memref<8x128xf32, #tpu.memory_space<vmem>>, %arg18: memref<8x128xf32, #tpu.memory_space<vmem>>, %arg19: memref<8x128xf32, #tpu.memory_space<vmem>>) attributes {dimension_semantics = [#tpu.dimension_semantics<arbitrary>], iteration_bounds = array<i64: 1>, scalar_prefetch = 0 : i64, scratch_operands = 2 : i64, tpu.core_type = #tpu.core_type<tc>, window_params = [{transform_indices = @transform_0, window_bounds = array<i64: 1, 8, 128>}, {pipeline_mode = #tpu.pipeline_mode<synchronous>, transform_indices = @transform_1, window_bounds = array<i64: 8, 128>}, {pipeline_mode = #tpu.pipeline_mode<synchronous>, transform_indices = @transform_2, window_bounds = array<i64: 8, 128>}, {pipeline_mode = #tpu.pipeline_mode<synchronous>, transform_indices = @transform_3, window_bounds = array<i64: 8, 16, 128>}, {pipeline_mode = #tpu.pipeline_mode<synchronous>, transform_indices = @transform_4, window_bounds = array<i64: 8, 16, 128>}, {pipeline_mode = #tpu.pipeline_mode<synchronous>, transform_indices = @transform_5, window_bounds = array<i64: 128, 640>}, {pipeline_mode = #tpu.pipeline_mode<synchronous>, transform_indices = @transform_6, window_bounds = array<i64: 128, 512>}, {pipeline_mode = #tpu.pipeline_mode<synchronous>, transform_indices = @transform_7, window_bounds = array<i64: 128, 512>}, {pipeline_mode = #tpu.pipeline_mode<synchronous>, transform_indices = @transform_8, window_bounds = array<i64: 1, 512>}, {pipeline_mode = #tpu.pipeline_mode<synchronous>, transform_indices = @transform_9, window_bounds = array<i64: 1, 128>}, {pipeline_mode = #tpu.pipeline_mode<synchronous>, transform_indices = @transform_10, window_bounds = array<i64: 128, 512>}, {pipeline_mode = #tpu.pipeline_mode<synchronous>, transform_indices = @transform_11, window_bounds = array<i64: 1, 512>}, {pipeline_mode = #tpu.pipeline_mode<synchronous>, transform_indices = @transform_12, window_bounds = array<i64: 128, 128>}, {pipeline_mode = #tpu.pipeline_mode<synchronous>, transform_indices = @transform_13, window_bounds = array<i64: 1, 128>}, {transform_indices = @transform_14, window_bounds = array<i64: 1, 8, 128>}, {pipeline_mode = #tpu.pipeline_mode<synchronous>, transform_indices = @transform_15, window_bounds = array<i64: 8, 128>}, {pipeline_mode = #tpu.pipeline_mode<synchronous>, transform_indices = @transform_16, window_bounds = array<i64: 8, 128>}]} {
    %c0_i32 = arith.constant 0 : i32
    %0 = arith.cmpi eq, %arg0, %c0_i32 : i32
    %1 = arith.extui %0 : i1 to i32
    %c0_i32_0 = arith.constant 0 : i32
    %2 = arith.cmpi ne, %1, %c0_i32_0 : i32
    scf.if %2 {
      %c0_58 = arith.constant 0 : index
      %c0_59 = arith.constant 0 : index
      %128 = vector.load %arg2[%c0_58, %c0_59] : memref<8x128xf32, #tpu.memory_space<vmem>>, vector<8x128xf32>
      %c0_60 = arith.constant 0 : index
      %c0_61 = arith.constant 0 : index
      %129 = vector.load %arg18[%c0_60, %c0_61] : memref<8x128xf32, #tpu.memory_space<vmem>>, vector<8x128xf32>
      tpu.vector_store %arg18[%c0_60, %c0_61], %128 {strides = array<i32>} : memref<8x128xf32, #tpu.memory_space<vmem>>, vector<8x128xf32>,
      %c0_62 = arith.constant 0 : index
      %c0_63 = arith.constant 0 : index
      %130 = vector.load %arg3[%c0_62, %c0_63] : memref<8x128xf32, #tpu.memory_space<vmem>>, vector<8x128xf32>
      %c0_64 = arith.constant 0 : index
      %c0_65 = arith.constant 0 : index
      %131 = vector.load %arg19[%c0_64, %c0_65] : memref<8x128xf32, #tpu.memory_space<vmem>>, vector<8x128xf32>
      tpu.vector_store %arg19[%c0_64, %c0_65], %130 {strides = array<i32>} : memref<8x128xf32, #tpu.memory_space<vmem>>, vector<8x128xf32>,
    } else {
    }
    %c0 = arith.constant 0 : index
    %c0_1 = arith.constant 0 : index
    %3 = vector.load %arg18[%c0, %c0_1] : memref<8x128xf32, #tpu.memory_space<vmem>>, vector<8x128xf32>
    %c0_2 = arith.constant 0 : index
    %c0_3 = arith.constant 0 : index
    %4 = vector.load %arg19[%c0_2, %c0_3] : memref<8x128xf32, #tpu.memory_space<vmem>>, vector<8x128xf32>
    %5 = arith.truncf %3 : vector<8x128xf32> to vector<8x128xbf16>
    %c0_4 = arith.constant 0 : index
    %c0_5 = arith.constant 0 : index
    %6 = vector.load %arg6[%c0_4, %c0_5] : memref<128x640xbf16, #tpu.memory_space<vmem>>, vector<128x640xbf16>
    %cst = arith.constant dense<0.000000e+00> : vector<8x640xf32>
    %7 = tpu.matmul %5, %6, %cst {dimension_numbers = #tpu.dot_dimension_numbers<[1], [0], [0], [1], [0, 0, 1, 1], [], []>} : vector<8x128xbf16>, vector<128x640xbf16>, vector<8x640xf32> -> vector<8x640xf32>
    %c0_6 = arith.constant 0 : index
    %c0_7 = arith.constant 0 : index
    %c0_8 = arith.constant 0 : index
    %8 = vector.load %arg1[%c0_6, %c0_7, %c0_8] : memref<1x8x128xf32, #tpu.memory_space<vmem>>, vector<1x8x128xf32>
    %9 = vector.shape_cast %8 : vector<1x8x128xf32> to vector<8x128xf32>
    %10 = arith.truncf %9 : vector<8x128xf32> to vector<8x128xbf16>
    %c0_9 = arith.constant 0 : index
    %c0_10 = arith.constant 0 : index
    %11 = vector.load %arg7[%c0_9, %c0_10] : memref<128x512xbf16, #tpu.memory_space<vmem>>, vector<128x512xbf16>
    %cst_11 = arith.constant dense<0.000000e+00> : vector<8x512xf32>
    %12 = tpu.matmul %10, %11, %cst_11 {dimension_numbers = #tpu.dot_dimension_numbers<[1], [0], [0], [1], [0, 0, 1, 1], [], []>} : vector<8x128xbf16>, vector<128x512xbf16>, vector<8x512xf32> -> vector<8x512xf32>
    %13 = vector.extract_strided_slice %7 {offsets = [0, 0], sizes = [8, 128], strides = [1, 1]} : vector<8x640xf32> to vector<8x128xf32>
    %14 = vector.extract_strided_slice %7 {offsets = [0, 128], sizes = [8, 512], strides = [1, 1]} : vector<8x640xf32> to vector<8x512xf32>
    %15 = vector.shape_cast %13 : vector<8x128xf32> to vector<8x1x128xf32>
    %c0_12 = arith.constant 0 : index
    %c0_13 = arith.constant 0 : index
    %c0_14 = arith.constant 0 : index
    %16 = vector.load %arg5[%c0_12, %c0_13, %c0_14] : memref<8x16x128xf32, #tpu.memory_space<vmem>>, vector<8x16x128xf32>
    %17 = vector.broadcast %15 : vector<8x1x128xf32> to vector<8x16x128xf32>
    %18 = arith.addf %17, %16 : vector<8x16x128xf32>
    %19 = math.tanh %18 : vector<8x16x128xf32>
    %c0_15 = arith.constant 0 : index
    %c0_16 = arith.constant 0 : index
    %20 = vector.load %arg10[%c0_15, %c0_16] : memref<1x128xf32, #tpu.memory_space<vmem>>, vector<1x128xf32>
    %21 = vector.shape_cast %20 : vector<1x128xf32> to vector<1x1x128xf32>
    %22 = vector.broadcast %21 : vector<1x1x128xf32> to vector<8x16x128xf32>
    %23 = arith.mulf %19, %22 : vector<8x16x128xf32>
    %cst_17 = arith.constant dense<0.000000e+00> : vector<8x16xf32>
    %24 = vector.multi_reduction <add>, %23, %cst_17 [2] : vector<8x16x128xf32> to vector<8x16xf32>
    %cst_18 = arith.constant dense<0xFF800000> : vector<8xf32>
    %25 = vector.multi_reduction <maximumf>, %24, %cst_18 [1] : vector<8x16xf32> to vector<8xf32>
    %26 = vector.shape_cast %25 : vector<8xf32> to vector<8x1xf32>
    %27 = vector.broadcast %26 : vector<8x1xf32> to vector<8x16xf32>
    %28 = arith.subf %24, %27 : vector<8x16xf32>
    %29 = math.exp %28 : vector<8x16xf32>
    %cst_19 = arith.constant dense<0.000000e+00> : vector<8xf32>
    %30 = vector.multi_reduction <add>, %29, %cst_19 [1] : vector<8x16xf32> to vector<8xf32>
    %31 = vector.shape_cast %30 : vector<8xf32> to vector<8x1xf32>
    %32 = tpu.reciprocal %31 {approx = true} : vector<8x1xf32> -> vector<8x1xf32>
    %33 = vector.broadcast %32 : vector<8x1xf32> to vector<8x16xf32>
    %34 = arith.mulf %29, %33 : vector<8x16xf32>
    %35 = vector.shape_cast %34 : vector<8x16xf32> to vector<8x16x1xf32>
    %c0_20 = arith.constant 0 : index
    %c0_21 = arith.constant 0 : index
    %c0_22 = arith.constant 0 : index
    %36 = vector.load %arg4[%c0_20, %c0_21, %c0_22] : memref<8x16x128xf32, #tpu.memory_space<vmem>>, vector<8x16x128xf32>
    %37 = vector.broadcast %35 : vector<8x16x1xf32> to vector<8x16x128xf32>
    %38 = arith.mulf %37, %36 : vector<8x16x128xf32>
    %cst_23 = arith.constant dense<0.000000e+00> : vector<8x128xf32>
    %39 = vector.multi_reduction <add>, %38, %cst_23 [1] : vector<8x16x128xf32> to vector<8x128xf32>
    %40 = arith.addf %12, %14 : vector<8x512xf32>
    %c0_24 = arith.constant 0 : index
    %c0_25 = arith.constant 0 : index
    %41 = vector.load %arg9[%c0_24, %c0_25] : memref<1x512xf32, #tpu.memory_space<vmem>>, vector<1x512xf32>
    %42 = vector.broadcast %41 : vector<1x512xf32> to vector<8x512xf32>
    %43 = arith.addf %40, %42 : vector<8x512xf32>
    %44 = arith.truncf %39 : vector<8x128xf32> to vector<8x128xbf16>
    %c0_26 = arith.constant 0 : index
    %c0_27 = arith.constant 0 : index
    %45 = vector.load %arg8[%c0_26, %c0_27] : memref<128x512xbf16, #tpu.memory_space<vmem>>, vector<128x512xbf16>
    %cst_28 = arith.constant dense<0.000000e+00> : vector<8x512xf32>
    %46 = tpu.matmul %44, %45, %cst_28 {dimension_numbers = #tpu.dot_dimension_numbers<[1], [0], [0], [1], [0, 0, 1, 1], [], []>} : vector<8x128xbf16>, vector<128x512xbf16>, vector<8x512xf32> -> vector<8x512xf32>
    %47 = arith.addf %43, %46 : vector<8x512xf32>
    %48 = vector.extract_strided_slice %47 {offsets = [0, 0], sizes = [8, 128], strides = [1, 1]} : vector<8x512xf32> to vector<8x128xf32>
    %49 = arith.negf %48 : vector<8x128xf32>
    %50 = math.exp %49 : vector<8x128xf32>
    %cst_29 = arith.constant 1.000000e+00 : f32
    %51 = vector.broadcast %cst_29 : f32 to vector<8x128xf32>
    %52 = arith.addf %51, %50 : vector<8x128xf32>
    %53 = arith.divf %51, %52 : vector<8x128xf32>
    %54 = vector.extract_strided_slice %47 {offsets = [0, 128], sizes = [8, 128], strides = [1, 1]} : vector<8x512xf32> to vector<8x128xf32>
    %55 = arith.negf %54 : vector<8x128xf32>
    %56 = math.exp %55 : vector<8x128xf32>
    %cst_30 = arith.constant 1.000000e+00 : f32
    %57 = vector.broadcast %cst_30 : f32 to vector<8x128xf32>
    %58 = arith.addf %57, %56 : vector<8x128xf32>
    %59 = arith.divf %57, %58 : vector<8x128xf32>
    %60 = vector.extract_strided_slice %47 {offsets = [0, 256], sizes = [8, 128], strides = [1, 1]} : vector<8x512xf32> to vector<8x128xf32>
    %61 = math.tanh %60 : vector<8x128xf32>
    %62 = vector.extract_strided_slice %47 {offsets = [0, 384], sizes = [8, 128], strides = [1, 1]} : vector<8x512xf32> to vector<8x128xf32>
    %63 = arith.negf %62 : vector<8x128xf32>
    %64 = math.exp %63 : vector<8x128xf32>
    %cst_31 = arith.constant 1.000000e+00 : f32
    %65 = vector.broadcast %cst_31 : f32 to vector<8x128xf32>
    %66 = arith.addf %65, %64 : vector<8x128xf32>
    %67 = arith.divf %65, %66 : vector<8x128xf32>
    %68 = arith.mulf %59, %4 : vector<8x128xf32>
    %69 = arith.mulf %53, %61 : vector<8x128xf32>
    %70 = arith.addf %68, %69 : vector<8x128xf32>
    %71 = math.tanh %70 : vector<8x128xf32>
    %72 = arith.mulf %67, %71 : vector<8x128xf32>
    %73 = arith.truncf %72 : vector<8x128xf32> to vector<8x128xbf16>
    %c0_32 = arith.constant 0 : index
    %c0_33 = arith.constant 0 : index
    %74 = vector.load %arg11[%c0_32, %c0_33] : memref<128x512xbf16, #tpu.memory_space<vmem>>, vector<128x512xbf16>
    %cst_34 = arith.constant dense<0.000000e+00> : vector<8x512xf32>
    %75 = tpu.matmul %73, %74, %cst_34 {dimension_numbers = #tpu.dot_dimension_numbers<[1], [0], [0], [1], [0, 0, 1, 1], [], []>} : vector<8x128xbf16>, vector<128x512xbf16>, vector<8x512xf32> -> vector<8x512xf32>
    %c0_35 = arith.constant 0 : index
    %c0_36 = arith.constant 0 : index
    %76 = vector.load %arg12[%c0_35, %c0_36] : memref<1x512xf32, #tpu.memory_space<vmem>>, vector<1x512xf32>
    %77 = vector.broadcast %76 : vector<1x512xf32> to vector<8x512xf32>
    %78 = arith.addf %75, %77 : vector<8x512xf32>
    %79 = vector.extract_strided_slice %78 {offsets = [0, 0], sizes = [8, 128], strides = [1, 1]} : vector<8x512xf32> to vector<8x128xf32>
    %80 = arith.negf %79 : vector<8x128xf32>
    %81 = math.exp %80 : vector<8x128xf32>
    %cst_37 = arith.constant 1.000000e+00 : f32
    %82 = vector.broadcast %cst_37 : f32 to vector<8x128xf32>
    %83 = arith.addf %82, %81 : vector<8x128xf32>
    %84 = arith.divf %82, %83 : vector<8x128xf32>
    %85 = vector.extract_strided_slice %78 {offsets = [0, 128], sizes = [8, 128], strides = [1, 1]} : vector<8x512xf32> to vector<8x128xf32>
    %86 = arith.negf %85 : vector<8x128xf32>
    %87 = math.exp %86 : vector<8x128xf32>
    %cst_38 = arith.constant 1.000000e+00 : f32
    %88 = vector.broadcast %cst_38 : f32 to vector<8x128xf32>
    %89 = arith.addf %88, %87 : vector<8x128xf32>
    %90 = arith.divf %88, %89 : vector<8x128xf32>
    %91 = vector.extract_strided_slice %78 {offsets = [0, 256], sizes = [8, 128], strides = [1, 1]} : vector<8x512xf32> to vector<8x128xf32>
    %92 = math.tanh %91 : vector<8x128xf32>
    %93 = vector.extract_strided_slice %78 {offsets = [0, 384], sizes = [8, 128], strides = [1, 1]} : vector<8x512xf32> to vector<8x128xf32>
    %94 = arith.negf %93 : vector<8x128xf32>
    %95 = math.exp %94 : vector<8x128xf32>
    %cst_39 = arith.constant 1.000000e+00 : f32
    %96 = vector.broadcast %cst_39 : f32 to vector<8x128xf32>
    %97 = arith.addf %96, %95 : vector<8x128xf32>
    %98 = arith.divf %96, %97 : vector<8x128xf32>
    %99 = arith.mulf %90, %70 : vector<8x128xf32>
    %100 = arith.mulf %84, %92 : vector<8x128xf32>
    %101 = arith.addf %99, %100 : vector<8x128xf32>
    %102 = math.tanh %101 : vector<8x128xf32>
    %103 = arith.mulf %98, %102 : vector<8x128xf32>
    %104 = arith.truncf %103 : vector<8x128xf32> to vector<8x128xbf16>
    %c0_40 = arith.constant 0 : index
    %c0_41 = arith.constant 0 : index
    %105 = vector.load %arg13[%c0_40, %c0_41] : memref<128x128xbf16, #tpu.memory_space<vmem>>, vector<128x128xbf16>
    %cst_42 = arith.constant dense<0.000000e+00> : vector<8x128xf32>
    %106 = tpu.matmul %104, %105, %cst_42 {dimension_numbers = #tpu.dot_dimension_numbers<[1], [0], [0], [1], [0, 0, 1, 1], [], []>} : vector<8x128xbf16>, vector<128x128xbf16>, vector<8x128xf32> -> vector<8x128xf32>
    %c0_43 = arith.constant 0 : index
    %c0_44 = arith.constant 0 : index
    %107 = vector.load %arg14[%c0_43, %c0_44] : memref<1x128xf32, #tpu.memory_space<vmem>>, vector<1x128xf32>
    %108 = vector.broadcast %107 : vector<1x128xf32> to vector<8x128xf32>
    %109 = arith.addf %106, %108 : vector<8x128xf32>
    %cst_45 = arith.constant dense<0xFF800000> : vector<8xf32>
    %110 = vector.multi_reduction <maximumf>, %109, %cst_45 [1] : vector<8x128xf32> to vector<8xf32>
    %111 = vector.shape_cast %110 : vector<8xf32> to vector<8x1xf32>
    %112 = vector.broadcast %111 : vector<8x1xf32> to vector<8x128xf32>
    %113 = arith.subf %109, %112 : vector<8x128xf32>
    %114 = math.exp %113 : vector<8x128xf32>
    %cst_46 = arith.constant dense<0.000000e+00> : vector<8xf32>
    %115 = vector.multi_reduction <add>, %114, %cst_46 [1] : vector<8x128xf32> to vector<8xf32>
    %116 = vector.shape_cast %115 : vector<8xf32> to vector<8x1xf32>
    %117 = math.log %116 : vector<8x1xf32>
    %118 = arith.addf %111, %117 : vector<8x1xf32>
    %119 = vector.broadcast %118 : vector<8x1xf32> to vector<8x128xf32>
    %120 = arith.subf %109, %119 : vector<8x128xf32>
    %c0_47 = arith.constant 0 : index
    %c0_48 = arith.constant 0 : index
    %c0_49 = arith.constant 0 : index
    %121 = vector.load %arg15[%c0_47, %c0_48, %c0_49] : memref<1x8x128xf32, #tpu.memory_space<vmem>>, vector<1x8x128xf32>
    %122 = vector.shape_cast %121 : vector<1x8x128xf32> to vector<8x128xf32>
    %123 = vector.shape_cast %120 : vector<8x128xf32> to vector<1x8x128xf32>
    tpu.vector_store %arg15[%c0_47, %c0_48, %c0_49], %123 {strides = array<i32>} : memref<1x8x128xf32, #tpu.memory_space<vmem>>, vector<1x8x128xf32>,
    %c0_50 = arith.constant 0 : index
    %c0_51 = arith.constant 0 : index
    %124 = vector.load %arg18[%c0_50, %c0_51] : memref<8x128xf32, #tpu.memory_space<vmem>>, vector<8x128xf32>
    tpu.vector_store %arg18[%c0_50, %c0_51], %103 {strides = array<i32>} : memref<8x128xf32, #tpu.memory_space<vmem>>, vector<8x128xf32>,
    %c0_52 = arith.constant 0 : index
    %c0_53 = arith.constant 0 : index
    %125 = vector.load %arg19[%c0_52, %c0_53] : memref<8x128xf32, #tpu.memory_space<vmem>>, vector<8x128xf32>
    tpu.vector_store %arg19[%c0_52, %c0_53], %101 {strides = array<i32>} : memref<8x128xf32, #tpu.memory_space<vmem>>, vector<8x128xf32>,
    %c0_54 = arith.constant 0 : index
    %c0_55 = arith.constant 0 : index
    %126 = vector.load %arg16[%c0_54, %c0_55] : memref<8x128xf32, #tpu.memory_space<vmem>>, vector<8x128xf32>
    tpu.vector_store %arg16[%c0_54, %c0_55], %103 {strides = array<i32>} : memref<8x128xf32, #tpu.memory_space<vmem>>, vector<8x128xf32>,
    %c0_56 = arith.constant 0 : index
    %c0_57 = arith.constant 0 : index
    %127 = vector.load %arg17[%c0_56, %c0_57] : memref<8x128xf32, #tpu.memory_space<vmem>>, vector<8x128xf32>
    tpu.vector_store %arg17[%c0_56, %c0_57], %101 {strides = array<i32>} : memref<8x128xf32, #tpu.memory_space<vmem>>, vector<8x128xf32>,
    return
  }
  func.func @transform_0(%arg0: i32) -> (i32, i32, i32) {
    %c0_i32 = arith.constant 0 : i32
    %c0_i32_0 = arith.constant 0 : i32
    %c0_i32_1 = arith.constant 0 : i32
    return %arg0, %c0_i32, %c0_i32_0 : i32, i32, i32
  }
  func.func @transform_1(%arg0: i32) -> (i32, i32) {
    %c0_i32 = arith.constant 0 : i32
    %c0_i32_0 = arith.constant 0 : i32
    %c0_i32_1 = arith.constant 0 : i32
    return %c0_i32, %c0_i32_0 : i32, i32
  }
  func.func @transform_2(%arg0: i32) -> (i32, i32) {
    %c0_i32 = arith.constant 0 : i32
    %c0_i32_0 = arith.constant 0 : i32
    %c0_i32_1 = arith.constant 0 : i32
    return %c0_i32, %c0_i32_0 : i32, i32
  }
  func.func @transform_3(%arg0: i32) -> (i32, i32, i32) {
    %c0_i32 = arith.constant 0 : i32
    %c0_i32_0 = arith.constant 0 : i32
    %c0_i32_1 = arith.constant 0 : i32
    %c0_i32_2 = arith.constant 0 : i32
    return %c0_i32, %c0_i32_0, %c0_i32_1 : i32, i32, i32
  }
  func.func @transform_4(%arg0: i32) -> (i32, i32, i32) {
    %c0_i32 = arith.constant 0 : i32
    %c0_i32_0 = arith.constant 0 : i32
    %c0_i32_1 = arith.constant 0 : i32
    %c0_i32_2 = arith.constant 0 : i32
    return %c0_i32, %c0_i32_0, %c0_i32_1 : i32, i32, i32
  }
  func.func @transform_5(%arg0: i32) -> (i32, i32) {
    %c0_i32 = arith.constant 0 : i32
    %c0_i32_0 = arith.constant 0 : i32
    %c0_i32_1 = arith.constant 0 : i32
    return %c0_i32, %c0_i32_0 : i32, i32
  }
  func.func @transform_6(%arg0: i32) -> (i32, i32) {
    %c0_i32 = arith.constant 0 : i32
    %c0_i32_0 = arith.constant 0 : i32
    %c0_i32_1 = arith.constant 0 : i32
    return %c0_i32, %c0_i32_0 : i32, i32
  }
  func.func @transform_7(%arg0: i32) -> (i32, i32) {
    %c0_i32 = arith.constant 0 : i32
    %c0_i32_0 = arith.constant 0 : i32
    %c0_i32_1 = arith.constant 0 : i32
    return %c0_i32, %c0_i32_0 : i32, i32
  }
  func.func @transform_8(%arg0: i32) -> (i32, i32) {
    %c0_i32 = arith.constant 0 : i32
    %c0_i32_0 = arith.constant 0 : i32
    %c0_i32_1 = arith.constant 0 : i32
    return %c0_i32, %c0_i32_0 : i32, i32
  }
  func.func @transform_9(%arg0: i32) -> (i32, i32) {
    %c0_i32 = arith.constant 0 : i32
    %c0_i32_0 = arith.constant 0 : i32
    %c0_i32_1 = arith.constant 0 : i32
    return %c0_i32, %c0_i32_0 : i32, i32
  }
  func.func @transform_10(%arg0: i32) -> (i32, i32) {
    %c0_i32 = arith.constant 0 : i32
    %c0_i32_0 = arith.constant 0 : i32
    %c0_i32_1 = arith.constant 0 : i32
    return %c0_i32, %c0_i32_0 : i32, i32
  }
  func.func @transform_11(%arg0: i32) -> (i32, i32) {
    %c0_i32 = arith.constant 0 : i32
    %c0_i32_0 = arith.constant 0 : i32
    %c0_i32_1 = arith.constant 0 : i32
    return %c0_i32, %c0_i32_0 : i32, i32
  }
  func.func @transform_12(%arg0: i32) -> (i32, i32) {
    %c0_i32 = arith.constant 0 : i32
    %c0_i32_0 = arith.constant 0 : i32
    %c0_i32_1 = arith.constant 0 : i32
    return %c0_i32, %c0_i32_0 : i32, i32
  }
  func.func @transform_13(%arg0: i32) -> (i32, i32) {
    %c0_i32 = arith.constant 0 : i32
    %c0_i32_0 = arith.constant 0 : i32
    %c0_i32_1 = arith.constant 0 : i32
    return %c0_i32, %c0_i32_0 : i32, i32
  }
  func.func @transform_14(%arg0: i32) -> (i32, i32, i32) {
    %c0_i32 = arith.constant 0 : i32
    %c0_i32_0 = arith.constant 0 : i32
    %c0_i32_1 = arith.constant 0 : i32
    return %arg0, %c0_i32, %c0_i32_0 : i32, i32, i32
  }
  func.func @transform_15(%arg0: i32) -> (i32, i32) {
    %c0_i32 = arith.constant 0 : i32
    %c0_i32_0 = arith.constant 0 : i32
    %c0_i32_1 = arith.constant 0 : i32
    return %c0_i32, %c0_i32_0 : i32, i32
  }
  func.func @transform_16(%arg0: i32) -> (i32, i32) {
    %c0_i32 = arith.constant 0 : i32
    %c0_i32_0 = arith.constant 0 : i32
    %c0_i32_1 = arith.constant 0 : i32
    return %c0_i32, %c0_i32_0 : i32, i32
  }
}

</mosaic_0001>

<bundles_post_ra>
// kernel: tpu_custom_call.1
= control target key start
LH: loop header
LB: loop body
LE: loop exit
PB: predicated region body
PF: predicated region fallthrough
CT: control target
= control target key end

     0   :  { %s3899_s0 = inlined_call_operand.hbm [shape: f32[1,8,128], index: 0, kind: input, shape index: {}]   ;;  %s3900_s1 = inlined_call_operand.hbm [shape: f32[8,128], index: 1, kind: input, shape index: {}]   ;;  %s3901_s2 = inlined_call_operand.hbm [shape: f32[8,128], index: 2, kind: input, shape index: {}]   ;;  %s3902_s3 = inlined_call_operand.hbm [shape: f32[8,16,128], index: 3, kind: input, shape index: {}]   ;;  %s3903_s4 = inlined_call_operand.hbm [shape: f32[8,16,128], index: 4, kind: input, shape index: {}]   ;;  %s3904_s5 = inlined_call_operand.hbm [shape: bf16[128,640], index: 5, kind: input, shape index: {}]   ;;  %s3905_s6 = inlined_call_operand.hbm [shape: bf16[128,512], index: 6, kind: input, shape index: {}]   ;;  %s3906_s7 = inlined_call_operand.hbm [shape: bf16[128,512], index: 7, kind: input, shape index: {}]   ;;  %s3907_s8 = inlined_call_operand.vmem [shape: f32[1,512], index: 8, kind: input, shape index: {}]   ;;  %s3908_s9 = inlined_call_operand.hbm [shape: f32[1,128], index: 9, kind: input, shape index: {}]   ;;  %s3909_s10 = inlined_call_operand.hbm [shape: bf16[128,512], index: 10, kind: input, shape index: {}]   ;;  %s3910_s11 = inlined_call_operand.vmem [shape: f32[1,512], index: 11, kind: input, shape index: {}]   ;;  %s3911_s12 = inlined_call_operand.hbm [shape: bf16[128,128], index: 12, kind: input, shape index: {}]   ;;  %s3912_s13 = inlined_call_operand.vmem [shape: f32[1,128], index: 13, kind: input, shape index: {}]   ;;  %s3913_s14 = inlined_call_operand.hbm [shape: f32[1,8,128], index: 14, kind: output, shape index: {0}]   ;;  %s3914_s15 = inlined_call_operand.hbm [shape: f32[8,128], index: 15, kind: output, shape index: {1}]   ;;  %s3915_s16 = inlined_call_operand.hbm [shape: f32[8,128], index: 16, kind: output, shape index: {2}]  }
   0x1   :  { %3916 = sst [smem:[#allocation34_spill]] %s3899_s0 }
   0x2   :  { %22 = vsyncpa [#allocation5], 0 }
   0x3   :  { %23 = vsyncpa [#allocation8], 0 }
   0x4   :  { %24 = vsyncpa [#allocation11], 0 }
   0x5   :  { %25 = vsyncpa [#allocation14], 0 }
   0x6   :  { %26 = vsyncpa [#allocation17], 0 }
   0x7   :  { %27 = vsyncpa [#allocation20], 0 }
   0x8   :  { %28 = vsyncpa [#allocation6], 0  ;;  %s46_s23 = sshll.u32 %s3900_s1, 4  ;;  %s47_s23 = int_to_ptr.hbm [resolvable:$true] %s46_s23 }
   0x9   :  { %29 = vsyncpa [#allocation24], 0  ;;  %s3381_s24 = smov [#allocation7]   ;;  %s67_s28 = sshll.u32 %s3902_s3, 4  ;;  %s68_s28 = int_to_ptr.hbm [resolvable:$true] %s67_s28 }
   0xa   :  { %s48_s25 = sshll.u32 %s3381_s24, 4  ;;  %s3382_s29 = smov [#allocation10]   ;;  %s49_s25 = int_to_ptr.vmem [resolvable:$true] %s48_s25 }
   0xb   :  { %51 = dma.hbm_to_vmem [thread:$0]  %s47_s23, 128, %s49_s25, [#allocation8]  }
   0xc   :  { %s69_s30 = sshll.u32 %s3382_s29, 4  ;;  %s3383_s0 = smov 128   ;;  %s70_s30 = int_to_ptr.vmem [resolvable:$true] %s69_s30 }
   0xd   :  { %s3384_s17 = smov 8   ;;  %s93_s19 = sshll.u32 %s3904_s5, 4  ;;  %s94_s19 = int_to_ptr.hbm [resolvable:$true] %s93_s19 }
   0xe   :  { %75 = dma.hbm_to_vmem [thread:$0]  %s68_s28, 2048, %s70_s30, [#allocation11], %s3383_s0, %s3383_s0, %s3384_s17  }
   0xf   :  { %s3385_s20 = smov [#allocation13]   ;;  %s3386_s3 = smov 320  }
  0x10   :  { %s95_s21 = sshll.u32 %s3385_s20, 4  ;;  %s3387_s22 = smov 20   ;;  %s96_s21 = int_to_ptr.vmem [resolvable:$true] %s95_s21 }
  0x11   :  { %101 = dma.hbm_to_vmem [thread:$0]  %s94_s19, 5120, %s96_s21, [#allocation14], %s3386_s3, %s3386_s3, %s3387_s22  }
  0x12   :  { %s119_s25 = sshll.u32 %s3906_s7, 4  ;;  %s3388_s26 = smov [#allocation16]   ;;  %s120_s25 = int_to_ptr.hbm [resolvable:$true] %s119_s25 }
  0x13   :  { %s121_s27 = sshll.u32 %s3388_s26, 4  ;;  %s145_s30 = sshll.u32 %s3909_s10, 4  ;;  %s122_s27 = int_to_ptr.vmem [resolvable:$true] %s121_s27  ;;  %s146_s30 = int_to_ptr.hbm [resolvable:$true] %s145_s30 }
  0x14   :  { %s3389_s5 = smov 256   ;;  %s3390_s1 = smov 16  }
  0x15   :  { %127 = dma.hbm_to_vmem [thread:$0]  %s120_s25, 4096, %s122_s27, [#allocation17], %s3389_s5, %s3389_s5, %s3390_s1  }
  0x16   :  { %s3917_s20 = sld [smem:[#allocation34_spill]]  ;;  %s3391_s7 = smov [#allocation19]  }
  0x17   :  { %s147_s3 = sshll.u32 %s3391_s7, 4  ;;  %s3392_s10 = smov [#allocation4]   ;;  %s148_s3 = int_to_ptr.vmem [resolvable:$true] %s147_s3 }
  0x18   :  { %153 = dma.hbm_to_vmem [thread:$0]  %s146_s30, 4096, %s148_s3, [#allocation20], %s3389_s5, %s3389_s5, %s3390_s1  }
  0x19   :  { %s37_s22 = sshll.u32 %s3392_s10, 4  ;;  %s57_s26 = sshll.u32 %s3901_s2, 4  ;;  %s38_s22 = int_to_ptr.vmem [resolvable:$true] %s37_s22  ;;  %s58_s26 = int_to_ptr.hbm [resolvable:$true] %s57_s26 }
  0x1a   :  { %s80_s29 = sshll.u32 %s3903_s4, 4  ;;  %s3393_s28 = smov [#allocation9]   ;;  %s81_s29 = int_to_ptr.hbm [resolvable:$true] %s80_s29 }
  0x1b   :  { %s59_s18 = sshll.u32 %s3393_s28, 4  ;;  %s3394_s19 = smov [#allocation12]   ;;  %s60_s18 = int_to_ptr.vmem [resolvable:$true] %s59_s18 }
  0x1c   :  { %s35_s21 = sshll.u32 %s3917_s20, 4  ;;  %s82_s30 = sshll.u32 %s3394_s19, 4  ;;  %s36_s21 = int_to_ptr.hbm [resolvable:$true] %s35_s21  ;;  %s83_s30 = int_to_ptr.vmem [resolvable:$true] %s82_s30 }
  0x1d   :  { %40 = dma.hbm_to_vmem [thread:$0]  %s36_s21, 128, %s38_s22, [#allocation5]  }
  0x1e   :  { %62 = dma.hbm_to_vmem [thread:$0]  %s58_s26, 128, %s60_s18, [#allocation8]  }
  0x1f   :  { %s106_s3 = sshll.u32 %s3905_s6, 4  ;;  %s135_s4 = sshll.u32 %s3908_s9, 4  ;;  %s107_s3 = int_to_ptr.hbm [resolvable:$true] %s106_s3  ;;  %s136_s4 = int_to_ptr.hbm [resolvable:$true] %s135_s4 }
  0x20   :  { %88 = dma.hbm_to_vmem [thread:$0]  %s81_s29, 2048, %s83_s30, [#allocation11], %s3383_s0, %s3383_s0, %s3384_s17  }
  0x21   :  { %s3395_s10 = smov [#allocation15]   ;;  %s3396_s23 = smov [#allocation18]  }
  0x22   :  { %s108_s22 = sshll.u32 %s3395_s10, 4  ;;  %s137_s6 = sshll.u32 %s3396_s23, 4  ;;  %s109_s22 = int_to_ptr.vmem [resolvable:$true] %s108_s22  ;;  %s138_s6 = int_to_ptr.vmem [resolvable:$true] %s137_s6 }
  0x23   :  { %114 = dma.hbm_to_vmem [thread:$0]  %s107_s3, 4096, %s109_s22, [#allocation14], %s3389_s5, %s3389_s5, %s3390_s1  }
  0x24   :  { %s160_s25 = sshll.u32 %s3911_s12, 4  ;;  %s3397_s0 = smov [#allocation21]   ;;  %s161_s25 = int_to_ptr.hbm [resolvable:$true] %s160_s25 }
  0x25   :  { %140 = dma.hbm_to_vmem [thread:$0]  %s136_s4, 16, %s138_s6, [#allocation17]  }
  0x26   :  { %s162_s17 = sshll.u32 %s3397_s0, 4  ;;  %s3398_s9 = smov 64   ;;  %s163_s17 = int_to_ptr.vmem [resolvable:$true] %s162_s17 }
  0x27   :  { %s3399_s27 = smov 4  }
  0x28   :  { %168 = dma.hbm_to_vmem [thread:$0]  %s161_s25, 1024, %s163_s17, [#allocation20], %s3398_s9, %s3398_s9, %s3399_s27  }
  0x29   :  { %3365 = dma.done.wait [#allocation5], 128  }
  0x2a   :  { %3366 = vsyncadd [#allocation5], 4294967168 }
  0x2b   :  { %3367 = dma.done.wait [#allocation8], 256  }
  0x2c   :  { %3368 = vsyncadd [#allocation8], 4294967040 }
  0x2d   :  { %3369 = dma.done.wait [#allocation11], 4096  }
  0x2e   :  { %3370 = vsyncadd [#allocation11], 4294963200 }
  0x2f   :  { %3371 = dma.done.wait [#allocation14], 9216  }
  0x30   :  { %3372 = vsyncadd [#allocation14], 4294958080 }
  0x31   :  { %3373 = dma.done.wait [#allocation17], 4112  }
  0x32   :  { %3374 = vsyncadd [#allocation17], 4294963184 }
  0x33   :  { %3375 = dma.done.wait [#allocation20], 5120  }
  0x34   :  { %3376 = vsyncadd [#allocation20], 4294962176  ;;  %v2315_v0 = vld [vmem:[#allocation13 + $0x118] sm:$0xf]  ;;  %v2792_v1 = vld [vmem:[#allocation13 + $0x128] sm:$0xf0] }
  0x35   :  { %v2295_v2 = vld [vmem:[#allocation13 + $0xf0] sm:$0xf]  ;;  %v2316_v3 = vor.u32 %v2792_v1, %v2315_v0  ;;  %v2787_v4 = vld [vmem:[#allocation13 + $0x100] sm:$0xf0]  ;;  %v2275_v6 = vld [vmem:[#allocation13 + $0xc8] sm:$0xf] }
  0x36   :  { %v2296_v5 = vor.u32 %v2787_v4, %v2295_v2  ;;  %v2782_v7 = vld [vmem:[#allocation13 + $0xd8] sm:$0xf0]  ;;  %v2255_v9 = vld [vmem:[#allocation13 + $0xa0] sm:$0xf]  ;;  %v2777_v10 = vld [vmem:[#allocation13 + $0xb0] sm:$0xf0] }
  0x37   :  { %482 = vmatpush.bf16.msra.mxu0 %v2316_v3  ;;  %v2276_v8 = vor.u32 %v2782_v7, %v2275_v6  ;;  %v2256_v11 = vor.u32 %v2777_v10, %v2255_v9  ;;  %v2235_v12 = vld [vmem:[#allocation13 + $0x78] sm:$0xf]  ;;  %v2772_v13 = vld [vmem:[#allocation13 + $0x88] sm:$0xf0]  ;;  %v2215_v15 = vld [vmem:[#allocation13 + $0x50] sm:$0xf] }
  0x38   :  { %v2236_v14 = vor.u32 %v2772_v13, %v2235_v12  ;;  %v2767_v16 = vld [vmem:[#allocation13 + $0x60] sm:$0xf0]  ;;  %v2195_v18 = vld [vmem:[#allocation13 + $0x28] sm:$0xf]  ;;  %v2762_v19 = vld [vmem:[#allocation13 + $0x38] sm:$0xf0] }
  0x39   :  { %v2216_v17 = vor.u32 %v2767_v16, %v2215_v15  ;;  %v2196_v20 = vor.u32 %v2762_v19, %v2195_v18  ;;  %v2175_v21 = vld [vmem:[#allocation13] sm:$0xf]  ;;  %v2757_v22 = vld [vmem:[#allocation13 + $0x10] sm:$0xf0]  ;;  %v590_v36 = vld [vmem:[#allocation12 + $0x8] sm:$0xff]  ;;  %vm726_vm0 = vcmask 130112  }
  0x3a   :  { %v2176_v23 = vor.u32 %v2757_v22, %v2175_v21  ;;  %v219_v24 = vld [vmem:[#allocation7] sm:$0xff]  ;;  %v589_v27 = vld [vmem:[#allocation12] sm:$0xff]  ;;  %v594_v39 = vld [vmem:[#allocation12 + $0x28] sm:$0xff]  ;;  %vm749_vm1 = vcmask 1041409   ;;  %vm751_vm2 = vcmask 1042434   ;;  %vm753_vm3 = vcmask 1043459  }
  0x3b   :  { %483 = vmatpush.bf16.msra.mxu0 %v2296_v5  ;;  %v3537_v25 = vpack.c.bf16 %v219_v24, %v219_v24  ;;  %v593_v31 = vld [vmem:[#allocation12 + $0x20] sm:$0xff]  ;;  %v591_v32 = vld [vmem:[#allocation12 + $0x10] sm:$0xff]  ;;  %v592_v41 = vld [vmem:[#allocation12 + $0x18] sm:$0xff]  ;;  %vm755_vm4 = vcmask 1044484   ;;  %vm757_vm5 = vcmask 1045509   ;;  %vm759_vm6 = vcmask 1046534  }
  0x3c   :  { %v3546_v44 = vld [vmem:[#allocation18] ss:$0 sm:$0xff]  ;;  %v595_v51 = vld [vmem:[#allocation12 + $0x30] sm:$0xff]  ;;  %v596_v59 = vld [vmem:[#allocation12 + $0x38] sm:$0xff]  ;;  %vm761_vm7 = vcmask 1047559   ;;  %vm764_vm8 = vcmask 130048  }
  0x3d   :  { %v597_v56 = vld [vmem:[#allocation12 + $0x40] sm:$0xff]  ;;  %v598_v3 = vld [vmem:[#allocation12 + $0x48] sm:$0xff]  ;;  %v600_v6 = vld [vmem:[#allocation12 + $0x58] sm:$0xff]  ;;  %s2138_s19 = sshll.u32 %s3914_s15, 4  ;;  %s3401_s30 = smov [#allocation23]   ;;  %s2139_s19 = int_to_ptr.hbm [resolvable:$true] %s2138_s19 }
  0x3e   :  { %v599_v9 = vld [vmem:[#allocation12 + $0x50] sm:$0xff]  ;;  %v601_v19 = vld [vmem:[#allocation12 + $0x60] sm:$0xff]  ;;  %s2136_s20 = sshll.u32 %s3401_s30, 4  ;;  %s2149_s21 = sshll.u32 %s3915_s16, 4  ;;  %s2137_s20 = int_to_ptr.vmem [resolvable:$true] %s2136_s20  ;;  %s2150_s21 = int_to_ptr.hbm [resolvable:$true] %s2149_s21 }
  0x3f   :  { %484 = vmatpush.bf16.msra.mxu0 %v2276_v8  ;;  %v603_v22 = vld [vmem:[#allocation12 + $0x70] sm:$0xff]  ;;  %s3403_s15 = smov [#allocation22]   ;;  %s2127_s23 = sshll.u32 %s3913_s14, 4  ;;  %s2128_s23 = int_to_ptr.hbm [resolvable:$true] %s2127_s23 }
  0x40   :  { %s2125_s4 = sshll.u32 %s3403_s15, 4  ;;  %s2126_s4 = int_to_ptr.vmem [resolvable:$true] %s2125_s4 }
  0x43   :  { %485 = vmatpush.bf16.msra.mxu0 %v2256_v11 }
  0x47   :  { %486 = vmatpush.bf16.msra.mxu0 %v2236_v14 }
  0x4b   :  { %487 = vmatpush.bf16.msra.mxu0 %v2216_v17 }
  0x4f   :  { %488 = vmatpush.bf16.msra.mxu0 %v2196_v20 }
  0x53   :  { %489 = vmatpush.bf16.msra.mxu0 %v2176_v23 }
  0x56   :  { %490 = vmatmul.bf16.vlgmr.msra.gmra.mxu0 %v3537_v25 }
  0xd3   :  { %v3540_v26 = vpop.f32.mrf.mxu0 }
  0xd4   :  { %v605_v28 = vperm.slane %v3540_v26, 0  ;;  %v583_v29 = vrot.slane %v3540_v26, 2  ;;  %v582_v30 = vrot.slane %v3540_v26, 1  ;;  %v584_v42 = vrot.slane %v3540_v26, 3 }
  0xd5   :  { %v585_v46 = vrot.slane %v3540_v26, 4  ;;  %v586_v62 = vrot.slane %v3540_v26, 5  ;;  %v587_v10 = vrot.slane %v3540_v26, 6  ;;  %v588_v13 = vrot.slane %v3540_v26, 7 }
  0xd6   :  { %v621_v33 = vadd.f32 %v605_v28, %v589_v27  ;;  %v607_v34 = vperm.slane %v583_v29, 0  ;;  %v606_v35 = vperm.slane %v582_v30, 0  ;;  %v622_v40 = vadd.f32 %v605_v28, %v590_v36  ;;  %v602_v27 = vld [vmem:[#allocation12 + $0x68] sm:$0xff] }
  0xd7   :  { %v608_v49 = vperm.slane %v584_v42, 0  ;;  %v609_v53 = vperm.slane %v585_v46, 0  ;;  %v610_v4 = vperm.slane %v586_v62, 0  ;;  %v611_v16 = vperm.slane %v587_v10, 0 }
  0xd8   :  { %2927 = vtanh.f32 %v621_v33  ;;  %v625_v37 = vadd.f32 %v607_v34, %v593_v31  ;;  %v623_v38 = vadd.f32 %v606_v35, %v591_v32  ;;  %v626_v45 = vadd.f32 %v607_v34, %v594_v39  ;;  %v604_v33 = vld [vmem:[#allocation12 + $0x78] sm:$0xff] }
  0xd9   :  { %v624_v47 = vadd.f32 %v606_v35, %v592_v41  ;;  %v627_v58 = vadd.f32 %v608_v49, %v595_v51  ;;  %v629_v61 = vadd.f32 %v609_v53, %v597_v56  ;;  %v628_v63 = vadd.f32 %v608_v49, %v596_v59 }
  0xda   :  { %2929 = vtanh.f32 %v625_v37  ;;  %v630_v8 = vadd.f32 %v609_v53, %v598_v3  ;;  %v632_v12 = vadd.f32 %v610_v4, %v600_v6  ;;  %v631_v14 = vadd.f32 %v610_v4, %v599_v9 }
  0xdb   :  { %v493_v43 = vpop.f32.mrf.mxu0  ;;  %2931 = vtanh.f32 %v623_v38  ;;  %v612_v20 = vperm.slane %v588_v13, 0  ;;  %v633_v24 = vadd.f32 %v611_v16, %v601_v19  ;;  %v634_v29 = vadd.f32 %v611_v16, %v602_v27 }
  0xdc   :  { %2933 = vtanh.f32 %v622_v40 }
  0xdd   :  { %2935 = vtanh.f32 %v626_v45  ;;  %v635_v28 = vadd.f32 %v612_v20, %v603_v22  ;;  %v636_v36 = vadd.f32 %v612_v20, %v604_v33  ;;  %v3400_v33 = vmov 0  }
  0xde   :  { %v2928_v48 = vpop.eup %2927  ;;  %2937 = vtanh.f32 %v624_v47  ;;  %2924 = vset.pattern.permute.xlu1 %v3400_v33  ;;  %2923 = vset.pattern.permute.xlu0 %v3400_v33 }
  0xdf   :  { %v657_v50 = vmul.f32 %v2928_v48, %v3546_v44  ;;  %2939 = vtanh.f32 %v627_v58  ;;  %2922 = vset.pattern.permute.xlu2 %v3400_v33 }
  0xe0   :  { %v2930_v52 = vpop.eup %2929  ;;  %2941 = vtanh.f32 %v629_v61 }
  0xe1   :  { %v2932_v54 = vpop.eup %2931  ;;  %673 = vadd.xlane.f32.xlu0 %v657_v50  ;;  %v661_v55 = vmul.f32 %v2930_v52, %v3546_v44  ;;  %2943 = vtanh.f32 %v628_v63 }
  0xe2   :  { %v659_v57 = vmul.f32 %v2932_v54, %v3546_v44  ;;  %v2934_v60 = vpop.eup %2933  ;;  %2945 = vtanh.f32 %v630_v8  ;;  %v721_v54 = vlaneseq }
  0xe3   :  { %681 = vadd.xlane.f32.xlu2 %v661_v55  ;;  %v2936_v0 = vpop.eup %2935  ;;  %v658_v2 = vmul.f32 %v2934_v60, %v3546_v44  ;;  %2947 = vtanh.f32 %v632_v12 }
  0xe4   :  { %677 = vadd.xlane.f32.xlu1 %v659_v57  ;;  %v2938_v1 = vpop.eup %2937  ;;  %v662_v5 = vmul.f32 %v2936_v0, %v3546_v44  ;;  %2949 = vtanh.f32 %v631_v14 }
  0xe5   :  { %v660_v7 = vmul.f32 %v2938_v1, %v3546_v44  ;;  %v2940_v11 = vpop.eup %2939  ;;  %2951 = vtanh.f32 %v633_v24 }
  0xe6   :  { %v2942_v15 = vpop.eup %2941  ;;  %v663_v18 = vmul.f32 %v2940_v11, %v3546_v44  ;;  %2953 = vtanh.f32 %v635_v28 }
  0xe7   :  { %v2944_v17 = vpop.eup %2943  ;;  %v665_v21 = vmul.f32 %v2942_v15, %v3546_v44  ;;  %2955 = vtanh.f32 %v634_v29 }
  0xe8   :  { %v664_v23 = vmul.f32 %v2944_v17, %v3546_v44  ;;  %v2946_v26 = vpop.eup %2945  ;;  %2957 = vtanh.f32 %v636_v36 }
  0xe9   :  { %675 = vadd.xlane.f32.xlu0 %v658_v2  ;;  %v2948_v30 = vpop.eup %2947  ;;  %v666_v32 = vmul.f32 %v2946_v26, %v3546_v44 }
  0xea   :  { %v2950_v31 = vpop.eup %2949  ;;  %v668_v34 = vmul.f32 %v2948_v30, %v3546_v44 }
  0xeb   :  { %683 = vadd.xlane.f32.xlu2 %v662_v5  ;;  %v667_v35 = vmul.f32 %v2950_v31, %v3546_v44  ;;  %v2952_v37 = vpop.eup %2951 }
  0xec   :  { %679 = vadd.xlane.f32.xlu1 %v660_v7  ;;  %v2954_v38 = vpop.eup %2953  ;;  %v669_v40 = vmul.f32 %v2952_v37, %v3546_v44 }
  0xed   :  { %v2956_v39 = vpop.eup %2955  ;;  %v671_v41 = vmul.f32 %v2954_v38, %v3546_v44 }
  0xee   :  { %v670_v42 = vmul.f32 %v2956_v39, %v3546_v44  ;;  %v2958_v43 = vpop.eup %2957 }
  0xef   :  { %v672_v45 = vmul.f32 %v2958_v43, %v3546_v44  ;;  %v3586_v44 = vand.u32 127, %v721_v54 }
  0xf1   :  { %685 = vadd.xlane.f32.xlu0 %v663_v18  ;;  %v3591_v57 = vadd.s32 4294967288, %v3586_v44 }
  0xf3   :  { %689 = vadd.xlane.f32.xlu2 %v665_v21 }
  0xf4   :  { %687 = vadd.xlane.f32.xlu1 %v664_v23 }
  0xf9   :  { %691 = vadd.xlane.f32.xlu0 %v666_v32 }
  0xfb   :  { %695 = vadd.xlane.f32.xlu2 %v668_v34 }
  0xfc   :  { %693 = vadd.xlane.f32.xlu1 %v667_v35 }
 0x101   :  { %697 = vadd.xlane.f32.xlu0 %v669_v40 }
 0x103   :  { %701 = vadd.xlane.f32.xlu2 %v671_v41 }
 0x104   :  { %699 = vadd.xlane.f32.xlu1 %v670_v42 }
 0x109   :  { %703 = vadd.xlane.f32.xlu0 %v672_v45 }
 0x154   :  { %v3568_v46 = vpop.xlane.xlu0 %673 }
 0x155   :  { %v723_v0 = vperm.slane %v3568_v46, %v3586_v44 }
 0x156   :  { %v3570_v47 = vpop.xlane.xlu2 %681 }
 0x157   :  { %v3572_v48 = vpop.xlane.xlu1 %677  ;;  %v731_v3 = vperm.slane %v3570_v47, %v3586_v44 }
 0x158   :  { %v728_v61 = vperm.slane %v3572_v48, %v3586_v44 }
 0x15c   :  { %v3574_v49 = vpop.xlane.xlu0 %675 }
 0x15d   :  { %v725_v62 = vperm.slane %v3574_v49, %v3591_v57 }
 0x15e   :  { %v3576_v50 = vpop.xlane.xlu2 %683 }
 0x15f   :  { %v3578_v51 = vpop.xlane.xlu1 %679  ;;  %v732_v63 = vperm.slane %v3576_v50, %v3591_v57  ;;  %v727_v6 = vsel %vm726_vm0, %v725_v62, %v723_v0 }
 0x160   :  { %v729_v58 = vperm.slane %v3578_v51, %v3591_v57 }
 0x161   :  { %v733_v8 = vsel %vm726_vm0, %v732_v63, %v731_v3 }
 0x162   :  { %v730_v1 = vsel %vm726_vm0, %v729_v58, %v728_v61 }
 0x163   :  { %v750_v9 = vsel %vm749_vm1, %v730_v1, %v727_v6 }
 0x164   :  { %v3580_v52 = vpop.xlane.xlu0 %685  ;;  %v752_v17 = vsel %vm751_vm2, %v733_v8, %v750_v9 }
 0x165   :  { %v734_v7 = vperm.slane %v3580_v52, %v3586_v44 }
 0x166   :  { %v3582_v53 = vpop.xlane.xlu2 %689 }
 0x167   :  { %v3584_v55 = vpop.xlane.xlu1 %687  ;;  %v737_v10 = vperm.slane %v3582_v53, %v3586_v44 }
 0x168   :  { %v735_v2 = vperm.slane %v3584_v55, %v3591_v57 }
 0x16a   :  { %v736_v11 = vsel %vm726_vm0, %v735_v2, %v734_v7 }
 0x16b   :  { %v754_v18 = vsel %vm753_vm3, %v736_v11, %v752_v17 }
 0x16c   :  { %v3588_v56 = vpop.xlane.xlu0 %691 }
 0x16d   :  { %v738_v4 = vperm.slane %v3588_v56, %v3591_v57 }
 0x16e   :  { %v3597_v60 = vpop.xlane.xlu2 %695 }
 0x16f   :  { %v3595_v59 = vpop.xlane.xlu1 %693  ;;  %v741_v12 = vperm.slane %v3597_v60, %v3591_v57  ;;  %v739_v15 = vsel %vm726_vm0, %v738_v4, %v737_v10 }
 0x170   :  { %v740_v13 = vperm.slane %v3595_v59, %v3586_v44  ;;  %v756_v22 = vsel %vm755_vm4, %v739_v15, %v754_v18 }
 0x172   :  { %v742_v21 = vsel %vm726_vm0, %v741_v12, %v740_v13 }
 0x173   :  { %v758_v28 = vsel %vm757_vm5, %v742_v21, %v756_v22 }
 0x174   :  { %v3614_v5 = vpop.xlane.xlu0 %697 }
 0x175   :  { %v743_v19 = vperm.slane %v3614_v5, %v3586_v44 }
 0x176   :  { %v3637_v20 = vpop.xlane.xlu2 %701 }
 0x177   :  { %v3628_v14 = vpop.xlane.xlu1 %699  ;;  %v746_v27 = vperm.slane %v3637_v20, %v3586_v44 }
 0x178   :  { %v744_v16 = vperm.slane %v3628_v14, %v3591_v57 }
 0x17a   :  { %v745_v24 = vsel %vm726_vm0, %v744_v16, %v743_v19 }
 0x17b   :  { %v760_v30 = vsel %vm759_vm6, %v745_v24, %v758_v28 }
 0x17c   :  { %v3641_v23 = vpop.xlane.xlu0 %703 }
 0x17d   :  { %v747_v26 = vperm.slane %v3641_v23, %v3591_v57 }
 0x17f   :  { %v748_v29 = vsel %vm726_vm0, %v747_v26, %v746_v27 }
 0x180   :  { %v762_v31 = vsel %vm761_vm7, %v748_v29, %v760_v30 }
 0x181   :  { %v765_v32 = vsel %vm764_vm8, %v762_v31, -inf }
 0x182   :  { %766 = vmax.xlane.f32.xlu1 %v765_v32 }
 0x1f5   :  { %v3653_v34 = vpop.xlane.xlu1 %766 }
 0x1f6   :  { %v770_v35 = vperm.slane %v3653_v34, 1  ;;  %v769_v36 = vperm.slane %v3653_v34, 0  ;;  %v771_v40 = vperm.slane %v3653_v34, 2  ;;  %v773_v41 = vperm.slane %v3653_v34, 4 }
 0x1f7   :  { %v774_v62 = vperm.slane %v3653_v34, 5  ;;  %v776_v6 = vperm.slane %v3653_v34, 7  ;;  %v775_v12 = vperm.slane %v3653_v34, 6 }
 0x1f8   :  { %v787_v37 = vsub.f32 %v3572_v48, %v770_v35  ;;  %v786_v38 = vsub.f32 %v3574_v49, %v769_v36  ;;  %v785_v39 = vsub.f32 %v3568_v46, %v769_v36  ;;  %v790_v54 = vsub.f32 %v3576_v50, %v771_v40 }
 0x1f9   :  { %v793_v58 = vsub.f32 %v3582_v53, %v773_v41  ;;  %v788_v48 = vsub.f32 %v3578_v51, %v770_v35  ;;  %v772_v49 = vperm.slane %v3653_v34, 3  ;;  %v796_v53 = vsub.f32 %v3597_v60, %v774_v62 }
 0x1fa   :  { %v805_v42 = vmul.f32 1.442695, %v787_v37  ;;  %v803_v43 = vmul.f32 1.442695, %v786_v38  ;;  %v801_v45 = vmul.f32 1.442695, %v785_v39  ;;  %v789_v2 = vsub.f32 %v3570_v47, %v771_v40 }
 0x1fb   :  { %v811_v61 = vmul.f32 1.442695, %v790_v54  ;;  %v817_v46 = vmul.f32 1.442695, %v793_v58  ;;  %v807_v0 = vmul.f32 1.442695, %v788_v48  ;;  %v792_v51 = vsub.f32 %v3584_v55, %v772_v49 }
 0x1fc   :  { %2959 = vpow2.f32 %v805_v42  ;;  %v823_v4 = vmul.f32 1.442695, %v796_v53  ;;  %v809_v8 = vmul.f32 1.442695, %v789_v2  ;;  %v795_v60 = vsub.f32 %v3595_v59, %v774_v62 }
 0x1fd   :  { %2961 = vpow2.f32 %v803_v43  ;;  %v815_v3 = vmul.f32 1.442695, %v792_v51  ;;  %v799_v47 = vsub.f32 %v3637_v20, %v776_v6  ;;  %v791_v10 = vsub.f32 %v3580_v52, %v772_v49 }
 0x1fe   :  { %2963 = vpow2.f32 %v801_v45  ;;  %v821_v11 = vmul.f32 1.442695, %v795_v60  ;;  %v798_v18 = vsub.f32 %v3628_v14, %v775_v12  ;;  %v794_v52 = vsub.f32 %v3588_v56, %v773_v41 }
 0x1ff   :  { %2965 = vpow2.f32 %v811_v61  ;;  %v829_v13 = vmul.f32 1.442695, %v799_v47  ;;  %v813_v16 = vmul.f32 1.442695, %v791_v10  ;;  %v797_v14 = vsub.f32 %v3614_v5, %v775_v12 }
 0x200   :  { %2967 = vpow2.f32 %v817_v46  ;;  %v827_v19 = vmul.f32 1.442695, %v798_v18  ;;  %v819_v21 = vmul.f32 1.442695, %v794_v52  ;;  %v800_v28 = vsub.f32 %v3641_v23, %v776_v6 }
 0x201   :  { %2969 = vpow2.f32 %v807_v0  ;;  %v825_v56 = vmul.f32 1.442695, %v797_v14 }
 0x202   :  { %v3667_v63 = vpop.eup %2959  ;;  %2971 = vpow2.f32 %v815_v3  ;;  %v831_v29 = vmul.f32 1.442695, %v800_v28 }
 0x203   :  { %v3669_v1 = vpop.eup %2961  ;;  %856 = vperm.xlu1 %2924, %v3667_v63   ;;  %2973 = vpow2.f32 %v823_v4 }
 0x204   :  { %v3672_v50 = vpop.eup %2963  ;;  %853 = vperm.xlu0 %2923, %v3669_v1   ;;  %2975 = vpow2.f32 %v809_v8 }
 0x205   :  { %850 = vperm.xlu2 %2922, %v3672_v50   ;;  %v3680_v7 = vpop.eup %2965  ;;  %2977 = vpow2.f32 %v821_v11 }
 0x206   :  { %v3682_v9 = vpop.eup %2967  ;;  %2979 = vpow2.f32 %v829_v13 }
 0x207   :  { %v3685_v55 = vpop.eup %2969  ;;  %2981 = vpow2.f32 %v813_v16 }
 0x208   :  { %v3693_v15 = vpop.eup %2971  ;;  %2983 = vpow2.f32 %v827_v19 }
 0x209   :  { %v3695_v17 = vpop.eup %2973  ;;  %2985 = vpow2.f32 %v819_v21 }
 0x20a   :  { %v3698_v59 = vpop.eup %2975  ;;  %2987 = vpow2.f32 %v825_v56 }
 0x20b   :  { %865 = vperm.xlu1 %2924, %v3680_v7   ;;  %v3704_v20 = vpop.eup %2977  ;;  %2989 = vpow2.f32 %v831_v29 }
 0x20c   :  { %874 = vperm.xlu0 %2923, %v3682_v9   ;;  %v3706_v22 = vpop.eup %2979 }
 0x20d   :  { %859 = vperm.xlu2 %2922, %v3685_v55   ;;  %v3709_v24 = vpop.eup %2981 }
 0x20e   :  { %v3714_v27 = vpop.eup %2983 }
 0x20f   :  { %v3717_v26 = vpop.eup %2985 }
 0x210   :  { %v3721_v30 = vpop.eup %2987 }
 0x211   :  { %v3724_v31 = vpop.eup %2989 }
 0x213   :  { %871 = vperm.xlu1 %2924, %v3693_v15  }
 0x214   :  { %883 = vperm.xlu0 %2923, %v3695_v17  }
 0x215   :  { %862 = vperm.xlu2 %2922, %v3698_v59  }
 0x21b   :  { %880 = vperm.xlu1 %2924, %v3704_v20  }
 0x21c   :  { %892 = vperm.xlu0 %2923, %v3706_v22  }
 0x21d   :  { %868 = vperm.xlu2 %2922, %v3709_v24  }
 0x223   :  { %889 = vperm.xlu1 %2924, %v3714_v27  }
 0x225   :  { %877 = vperm.xlu2 %2922, %v3717_v26  }
 0x22d   :  { %886 = vperm.xlu2 %2922, %v3721_v30  }
 0x235   :  { %895 = vperm.xlu2 %2922, %v3724_v31  }
 0x25f   :  { %v851_v5 = vpop.permute.xlu2 %850 }
 0x260   :  { %v897_v54 = vperm.slane %v851_v5, %v3586_v44 }
 0x267   :  { %v860_v32 = vpop.permute.xlu2 %859 }
 0x268   :  { %v901_v58 = vperm.slane %v860_v32, %v3591_v57 }
 0x26f   :  { %v863_v33 = vpop.permute.xlu2 %862 }
 0x270   :  { %v903_v49 = vperm.slane %v863_v33, %v3586_v44 }
 0x275   :  { %v857_v34 = vpop.permute.xlu1 %856 }
 0x276   :  { %v854_v35 = vpop.permute.xlu0 %853  ;;  %v900_v42 = vperm.slane %v857_v34, %v3586_v44 }
 0x277   :  { %v869_v36 = vpop.permute.xlu2 %868  ;;  %v898_v43 = vperm.slane %v854_v35, %v3591_v57 }
 0x278   :  { %v902_v46 = vsel %vm726_vm0, %v901_v58, %v900_v42  ;;  %v906_v0 = vperm.slane %v869_v36, %v3586_v44 }
 0x279   :  { %v899_v62 = vsel %vm726_vm0, %v898_v43, %v897_v54 }
 0x27a   :  { %v921_v3 = vsel %vm749_vm1, %v902_v46, %v899_v62  ;;  %v2317_v46 = vld [vmem:[#allocation13 + $0x12c] sm:$0xf0]  ;;  %v2325_v62 = vld [vmem:[#allocation13 + $0x134] sm:$0xf0] }
 0x27d   :  { %v866_v37 = vpop.permute.xlu1 %865 }
 0x27e   :  { %v875_v38 = vpop.permute.xlu0 %874  ;;  %v904_v45 = vperm.slane %v866_v37, %v3591_v57 }
 0x27f   :  { %v878_v39 = vpop.permute.xlu2 %877  ;;  %v909_v4 = vperm.slane %v875_v38, %v3586_v44 }
 0x280   :  { %v905_v51 = vsel %vm726_vm0, %v904_v45, %v903_v49  ;;  %v910_v6 = vperm.slane %v878_v39, %v3591_v57 }
 0x281   :  { %v922_v47 = vsel %vm751_vm2, %v905_v51, %v921_v3  ;;  %v2331_v51 = vld [vmem:[#allocation13 + $0x128] sm:$0xf] }
 0x282   :  { %v911_v52 = vsel %vm726_vm0, %v910_v6, %v909_v4  ;;  %v2297_v4 = vld [vmem:[#allocation13 + $0x104] sm:$0xf0]  ;;  %v2786_v6 = vld [vmem:[#allocation13 + $0xfc] sm:$0xf] }
 0x285   :  { %v872_v23 = vpop.permute.xlu1 %871 }
 0x286   :  { %v884_v40 = vpop.permute.xlu0 %883  ;;  %v907_v48 = vperm.slane %v872_v23, %v3591_v57 }
 0x287   :  { %v887_v41 = vpop.permute.xlu2 %886  ;;  %v913_v10 = vperm.slane %v884_v40, %v3591_v57 }
 0x288   :  { %v908_v53 = vsel %vm726_vm0, %v907_v48, %v906_v0  ;;  %v915_v19 = vperm.slane %v887_v41, %v3586_v44  ;;  %v2793_v48 = vld [vmem:[#allocation13 + $0x130] sm:$0xf0] }
 0x289   :  { %v923_v11 = vsel %vm753_vm3, %v908_v53, %v922_v47  ;;  %v2794_v53 = vld [vmem:[#allocation13 + $0x138] sm:$0xf0]  ;;  %v2311_v47 = vld [vmem:[#allocation13 + $0x100] sm:$0xf] }
 0x28a   :  { %v924_v14 = vsel %vm755_vm4, %v911_v52, %v923_v11 }
 0x28d   :  { %v881_v61 = vpop.permute.xlu1 %880 }
 0x28e   :  { %v912_v2 = vperm.slane %v881_v61, %v3586_v44  ;;  %v893_v8 = vpop.permute.xlu0 %892  ;;  %v2790_v61 = vld [vmem:[#allocation13 + $0x11c] sm:$0xf] }
 0x28f   :  { %v896_v60 = vpop.permute.xlu2 %895  ;;  %v918_v13 = vperm.slane %v893_v8, %v3586_v44 }
 0x290   :  { %v914_v12 = vsel %vm726_vm0, %v913_v10, %v912_v2  ;;  %v919_v16 = vperm.slane %v896_v60, %v3591_v57  ;;  %v2303_v2 = vld [vmem:[#allocation13 + $0xf8] sm:$0xf]  ;;  %v2305_v60 = vld [vmem:[#allocation13 + $0x10c] sm:$0xf0]  ;;  %v2789_v10 = vld [vmem:[#allocation13 + $0x110] sm:$0xf0] }
 0x291   :  { %v925_v28 = vsel %vm757_vm5, %v914_v12, %v924_v14  ;;  %v2308_v11 = vor.u32 %v2786_v6, %v2305_v60  ;;  %v2312_v12 = vor.u32 %v2789_v10, %v2311_v47  ;;  %v2285_v14 = vld [vmem:[#allocation13 + $0xe4] sm:$0xf0]  ;;  %v2764_v60 = vld [vmem:[#allocation13 + $0x48] sm:$0xf0] }
 0x292   :  { %v920_v29 = vsel %vm726_vm0, %v919_v16, %v918_v13  ;;  %v2283_v13 = vld [vmem:[#allocation13 + $0xd0] sm:$0xf]  ;;  %v2783_v16 = vld [vmem:[#allocation13 + $0xe0] sm:$0xf0]  ;;  %v2205_v6 = vld [vmem:[#allocation13 + $0x44] sm:$0xf0] }
 0x293   :  { %v2284_v52 = vor.u32 %v2783_v16, %v2283_v13  ;;  %v2823_v13 = vld [vmem:[#allocation15 + $0xe4] sm:$0xf] }
 0x295   :  { %v890_v18 = vpop.permute.xlu1 %889 }
 0x296   :  { %v916_v21 = vperm.slane %v890_v18, %v3591_v57  ;;  %v2780_v18 = vld [vmem:[#allocation13 + $0xcc] sm:$0xf] }
 0x298   :  { %v917_v56 = vsel %vm726_vm0, %v916_v21, %v915_v19  ;;  %v2277_v19 = vld [vmem:[#allocation13 + $0xdc] sm:$0xf0]  ;;  %v2781_v21 = vld [vmem:[#allocation13 + $0xd4] sm:$0xf] }
 0x299   :  { %v926_v5 = vsel %vm759_vm6, %v917_v56, %v925_v28  ;;  %v2280_v56 = vor.u32 %v2780_v18, %v2277_v19  ;;  %v2288_v28 = vor.u32 %v2781_v21, %v2285_v14  ;;  %v2449_v18 = vld [vmem:[#allocation15 + $0xf0] sm:$0xf0]  ;;  %v2755_v19 = vld [vmem:[#allocation13 + $0x4] sm:$0xf]  ;;  %v2177_v21 = vld [vmem:[#allocation13 + $0x14] sm:$0xf0] }
 0x29a   :  { %v927_v32 = vsel %vm761_vm7, %v920_v29, %v926_v5  ;;  %v2291_v29 = vld [vmem:[#allocation13 + $0xd8] sm:$0xf]  ;;  %v2784_v5 = vld [vmem:[#allocation13 + $0xe8] sm:$0xf0] }
 0x29b   :  { %v929_v33 = vsel %vm764_vm8, %v927_v32, 0.0  ;;  %v2263_v32 = vld [vmem:[#allocation13 + $0xa8] sm:$0xf]  ;;  %v2756_v14 = vld [vmem:[#allocation13 + $0xc] sm:$0xf] }
 0x29c   :  { %930 = vadd.xlane.f32.xlu1 %v929_v33  ;;  %v2292_v33 = vor.u32 %v2784_v5, %v2291_v29  ;;  %v2191_v29 = vld [vmem:[#allocation13 + $0x10] sm:$0xf]  ;;  %v2759_v5 = vld [vmem:[#allocation13 + $0x20] sm:$0xf0] }
 0x30f   :  { %v931_v34 = vpop.xlane.xlu1 %930 }
 0x310   :  { %2991 = vrcp.f32 %v931_v34  ;;  %v2778_v34 = vld [vmem:[#allocation13 + $0xb8] sm:$0xf0] }
 0x316   :  { %v2992_v44 = vpop.eup %2991 }
 0x317   :  { %v939_v35 = vperm.slane %v2992_v44, 5  ;;  %v934_v57 = vperm.slane %v2992_v44, 0  ;;  %v935_v39 = vperm.slane %v2992_v44, 1  ;;  %v936_v41 = vperm.slane %v2992_v44, 2 }
 0x318   :  { %v938_v45 = vperm.slane %v2992_v44, 4  ;;  %v940_v54 = vperm.slane %v2992_v44, 6  ;;  %v941_v58 = vperm.slane %v2992_v44, 7 }
 0x319   :  { %v960_v36 = vmul.f32 %v3704_v20, %v939_v35  ;;  %v951_v37 = vmul.f32 %v3669_v1, %v934_v57  ;;  %v950_v38 = vmul.f32 %v3672_v50, %v934_v57  ;;  %v953_v23 = vmul.f32 %v3685_v55, %v935_v39  ;;  %v2257_v57 = vld [vmem:[#allocation13 + $0xb4] sm:$0xf0] }
 0x31a   :  { %v952_v40 = vmul.f32 %v3667_v63, %v935_v39  ;;  %v955_v42 = vmul.f32 %v3680_v7, %v936_v41  ;;  %v954_v43 = vmul.f32 %v3698_v59, %v936_v41  ;;  %v937_v1 = vperm.slane %v2992_v44, 3  ;;  %v2271_v39 = vld [vmem:[#allocation13 + $0xb0] sm:$0xf] }
 0x31b   :  { %1034 = vperm.xlu1 %2924, %v960_v36   ;;  %989 = vperm.xlu2 %2922, %v951_v37   ;;  %v959_v55 = vmul.f32 %v3717_v26, %v938_v45  ;;  %v958_v63 = vmul.f32 %v3682_v9, %v938_v45  ;;  %v962_v7 = vmul.f32 %v3721_v30, %v940_v54  ;;  %v2323_v9 = vld [vmem:[#allocation13 + $0x120] sm:$0xf]  ;;  %v2791_v30 = vld [vmem:[#allocation13 + $0x124] sm:$0xf]  ;;  %v2776_v36 = vld [vmem:[#allocation13 + $0xac] sm:$0xf] }
 0x31c   :  { %984 = vperm.xlu0 %2923, %v950_v38   ;;  %v957_v50 = vmul.f32 %v3693_v15, %v937_v1  ;;  %v956_v20 = vmul.f32 %v3709_v24, %v937_v1  ;;  %v961_v59 = vmul.f32 %v3695_v17, %v939_v35  ;;  %v964_v15 = vmul.f32 %v3706_v22, %v941_v58  ;;  %v2775_v35 = vld [vmem:[#allocation13 + $0xa4] sm:$0xf]  ;;  %v2265_v38 = vld [vmem:[#allocation13 + $0xbc] sm:$0xf0] }
 0x31d   :  { %v963_v24 = vmul.f32 %v3714_v27, %v940_v54  ;;  %v965_v26 = vmul.f32 %v3724_v31, %v941_v58  ;;  %v2324_v49 = vor.u32 %v2793_v48, %v2323_v9  ;;  %v2320_v17 = vor.u32 %v2790_v61, %v2317_v46  ;;  %v2788_v27 = vld [vmem:[#allocation13 + $0x108] sm:$0xf0]  ;;  %v2785_v31 = vld [vmem:[#allocation13 + $0xf4] sm:$0xf]  ;;  %v2771_v45 = vld [vmem:[#allocation13 + $0x84] sm:$0xf] }
 0x31e   :  { %v2328_v0 = vor.u32 %v2791_v30, %v2325_v62  ;;  %v2332_v22 = vor.u32 %v2794_v53, %v2331_v51  ;;  %v2304_v3 = vor.u32 %v2788_v27, %v2303_v2  ;;  %v2300_v8 = vor.u32 %v2785_v31, %v2297_v4  ;;  %v2251_v54 = vld [vmem:[#allocation13 + $0x88] sm:$0xf]  ;;  %v2765_v9 = vld [vmem:[#allocation13 + $0x54] sm:$0xf]  ;;  %v2766_v61 = vld [vmem:[#allocation13 + $0x5c] sm:$0xf] }
 0x31f   :  { %508 = vmatpush.bf16.msra.mxu2 %v2324_v49  ;;  %495 = vmatpush.bf16.msra.mxu1 %v2320_v17  ;;  %v2264_v44 = vor.u32 %v2778_v34, %v2263_v32  ;;  %v2260_v37 = vor.u32 %v2775_v35, %v2257_v57  ;;  %v2217_v48 = vld [vmem:[#allocation13 + $0x64] sm:$0xf0]  ;;  %v2225_v30 = vld [vmem:[#allocation13 + $0x6c] sm:$0xf0]  ;;  %v2231_v62 = vld [vmem:[#allocation13 + $0x60] sm:$0xf]  ;;  %v2192_v34 = vor.u32 %v2759_v5, %v2191_v29 }
 0x320   :  { %521 = vmatpush.bf16.msra.mxu3 %v2328_v0  ;;  %534 = vmatpush.bf16.msrb.mxu0 %v2332_v22  ;;  %v2220_v46 = vor.u32 %v2765_v9, %v2217_v48  ;;  %v2769_v17 = vld [vmem:[#allocation13 + $0x70] sm:$0xf0]  ;;  %v2228_v0 = vor.u32 %v2766_v61, %v2225_v30  ;;  %v2203_v53 = vld [vmem:[#allocation13 + $0x30] sm:$0xf]  ;;  %v2763_v2 = vld [vmem:[#allocation13 + $0x40] sm:$0xf0] }
 0x321   :  { %v2232_v51 = vor.u32 %v2769_v17, %v2231_v62  ;;  %v2204_v22 = vor.u32 %v2763_v2, %v2203_v53  ;;  %v2760_v27 = vld [vmem:[#allocation13 + $0x2c] sm:$0xf]  ;;  %v2761_v31 = vld [vmem:[#allocation13 + $0x34] sm:$0xf]  ;;  %v2825_v35 = vld [vmem:[#allocation15 + $0xec] sm:$0xf0] }
 0x322   :  { %v2208_v47 = vor.u32 %v2761_v31, %v2205_v6  ;;  %v2455_v57 = vld [vmem:[#allocation15 + $0xe8] sm:$0xf]  ;;  %v2415_v9 = vld [vmem:[#allocation15 + $0xa0] sm:$0xf]  ;;  %v2817_v48 = vld [vmem:[#allocation15 + $0xac] sm:$0xf0] }
 0x323   :  { %999 = vperm.xlu2 %2922, %v953_v23   ;;  %509 = vmatpush.bf16.msra.mxu2 %v2304_v3  ;;  %v2779_v23 = vld [vmem:[#allocation13 + $0xc0] sm:$0xf0]  ;;  %v2197_v3 = vld [vmem:[#allocation13 + $0x3c] sm:$0xf0]  ;;  %v2423_v61 = vld [vmem:[#allocation15 + $0xa8] sm:$0xf]  ;;  %v2416_v30 = vor.u32 %v2817_v48, %v2415_v9 }
 0x324   :  { %994 = vperm.xlu0 %2923, %v952_v40   ;;  %496 = vmatpush.bf16.msra.mxu1 %v2300_v8  ;;  %v2268_v40 = vor.u32 %v2776_v36, %v2265_v38  ;;  %v2272_v41 = vor.u32 %v2779_v23, %v2271_v39  ;;  %v2200_v4 = vor.u32 %v2760_v27, %v2197_v3  ;;  %v2211_v8 = vld [vmem:[#allocation13 + $0x38] sm:$0xf]  ;;  %v2824_v39 = vld [vmem:[#allocation15 + $0xec] sm:$0xf]  ;;  %v2457_v23 = vld [vmem:[#allocation15 + $0xf8] sm:$0xf0] }
 0x325   :  { %522 = vmatpush.bf16.msra.mxu3 %v2308_v11  ;;  %535 = vmatpush.bf16.msrb.mxu0 %v2312_v12  ;;  %v2212_v10 = vor.u32 %v2764_v60, %v2211_v8  ;;  %v2183_v11 = vld [vmem:[#allocation13 + $0x8] sm:$0xf]  ;;  %v2758_v12 = vld [vmem:[#allocation13 + $0x18] sm:$0xf0]  ;;  %v2826_v38 = vld [vmem:[#allocation15 + $0xf4] sm:$0xf0] }
 0x326   :  { %v2184_v16 = vor.u32 %v2758_v12, %v2183_v11  ;;  %v2818_v62 = vld [vmem:[#allocation15 + $0xb4] sm:$0xf0]  ;;  %v2816_v17 = vld [vmem:[#allocation15 + $0xac] sm:$0xf]  ;;  %v2811_v2 = vld [vmem:[#allocation15 + $0x84] sm:$0xf] }
 0x327   :  { %510 = vmatpush.bf16.msra.mxu2 %v2284_v52  ;;  %v2452_v52 = vor.u32 %v2823_v13, %v2449_v18  ;;  %v2813_v31 = vld [vmem:[#allocation15 + $0x8c] sm:$0xf0]  ;;  %v2814_v8 = vld [vmem:[#allocation15 + $0x94] sm:$0xf0]  ;;  %v2812_v60 = vld [vmem:[#allocation15 + $0x8c] sm:$0xf] }
 0x328   :  { %497 = vmatpush.bf16.msra.mxu1 %v2280_v56  ;;  %v2180_v56 = vor.u32 %v2755_v19, %v2177_v21  ;;  %v2807_v12 = vld [vmem:[#allocation15 + $0x64] sm:$0xf]  ;;  %v2385_v13 = vld [vmem:[#allocation15 + $0x70] sm:$0xf0]  ;;  %v2383_v18 = vld [vmem:[#allocation15 + $0x60] sm:$0xf] }
 0x329   :  { %523 = vmatpush.bf16.msra.mxu3 %v2288_v28  ;;  %536 = vmatpush.bf16.msrb.mxu0 %v2292_v33  ;;  %v2185_v28 = vld [vmem:[#allocation13 + $0x1c] sm:$0xf0]  ;;  %v2391_v19 = vld [vmem:[#allocation15 + $0x68] sm:$0xf]  ;;  %v2393_v29 = vld [vmem:[#allocation15 + $0x78] sm:$0xf0] }
 0x32a   :  { %v2188_v33 = vor.u32 %v2756_v14, %v2185_v28  ;;  %v2808_v28 = vld [vmem:[#allocation15 + $0x6c] sm:$0xf]  ;;  %v2802_v9 = vld [vmem:[#allocation15 + $0x34] sm:$0xf0] }
 0x32b   :  { %1009 = vperm.xlu2 %2922, %v955_v42   ;;  %511 = vmatpush.bf16.msra.mxu2 %v2264_v44  ;;  %v2243_v42 = vld [vmem:[#allocation13 + $0x80] sm:$0xf]  ;;  %v2800_v48 = vld [vmem:[#allocation15 + $0x2c] sm:$0xf] }
 0x32c   :  { %1004 = vperm.xlu0 %2923, %v954_v43   ;;  %v2773_v43 = vld [vmem:[#allocation13 + $0x90] sm:$0xf0]  ;;  %498 = vmatpush.bf16.msra.mxu1 %v2260_v37  ;;  %v2447_v44 = vld [vmem:[#allocation15 + $0xe0] sm:$0xf] }
 0x32d   :  { %v2244_v1 = vor.u32 %v2773_v43, %v2243_v42  ;;  %524 = vmatpush.bf16.msra.mxu3 %v2268_v40  ;;  %537 = vmatpush.bf16.msrb.mxu0 %v2272_v41  ;;  %v2448_v37 = vor.u32 %v2825_v35, %v2447_v44  ;;  %v2456_v40 = vor.u32 %v2826_v38, %v2455_v57  ;;  %v2819_v42 = vld [vmem:[#allocation15 + $0xc4] sm:$0xf]  ;;  %v2433_v43 = vld [vmem:[#allocation15 + $0xd0] sm:$0xf0]  ;;  %v969_v44 = vld [vmem:[#allocation10 + $0x18] sm:$0xff] }
 0x32e   :  { %v2460_v41 = vor.u32 %v2824_v39, %v2457_v23  ;;  %v968_v35 = vld [vmem:[#allocation10 + $0x10] sm:$0xff]  ;;  %v2396_v57 = vor.u32 %v2808_v28, %v2393_v29  ;;  %v2367_v38 = vld [vmem:[#allocation15 + $0x40] sm:$0xf]  ;;  %v2375_v23 = vld [vmem:[#allocation15 + $0x48] sm:$0xf] }
 0x32f   :  { %512 = vmatpush.bf16.msra.mxu2 %v2244_v1  ;;  %v2436_v1 = vor.u32 %v2819_v42, %v2433_v43  ;;  %v2805_v39 = vld [vmem:[#allocation15 + $0x4c] sm:$0xf0]  ;;  %v2804_v42 = vld [vmem:[#allocation15 + $0x4c] sm:$0xf]  ;;  %v2377_v43 = vld [vmem:[#allocation15 + $0x58] sm:$0xf0] }
 0x330   :  { %v2857_v28 = vld [vmem:[#allocation16 + $0xec] sm:$0xf0]  ;;  %v2855_v29 = vld [vmem:[#allocation16 + $0xe4] sm:$0xf] }
 0x333   :  { %1019 = vperm.xlu2 %2922, %v957_v50   ;;  %v2770_v50 = vld [vmem:[#allocation13 + $0x7c] sm:$0xf] }
 0x334   :  { %1014 = vperm.xlu0 %2923, %v956_v20   ;;  %v2237_v20 = vld [vmem:[#allocation13 + $0x8c] sm:$0xf0] }
 0x33b   :  { %1029 = vperm.xlu2 %2922, %v959_v55   ;;  %v2240_v55 = vor.u32 %v2770_v50, %v2237_v20  ;;  %v2431_v50 = vld [vmem:[#allocation15 + $0xc0] sm:$0xf]  ;;  %v2821_v20 = vld [vmem:[#allocation15 + $0xcc] sm:$0xf0] }
 0x33c   :  { %1024 = vperm.xlu0 %2923, %v958_v63   ;;  %v2245_v63 = vld [vmem:[#allocation13 + $0x94] sm:$0xf0] }
 0x33d   :  { %499 = vmatpush.bf16.msra.mxu1 %v2240_v55  ;;  %v2432_v55 = vor.u32 %v2821_v20, %v2431_v50 }
 0x341   :  { %500 = vmatpush.bf16.msra.mxu1 %v2220_v46 }
 0x343   :  { %1044 = vperm.xlu2 %2922, %v962_v7   ;;  %v2774_v7 = vld [vmem:[#allocation13 + $0x98] sm:$0xf0] }
 0x344   :  { %1039 = vperm.xlu0 %2923, %v961_v59   ;;  %v2248_v59 = vor.u32 %v2771_v45, %v2245_v63  ;;  %v2252_v58 = vor.u32 %v2774_v7, %v2251_v54  ;;  %v2439_v45 = vld [vmem:[#allocation15 + $0xc8] sm:$0xf]  ;;  %v2822_v63 = vld [vmem:[#allocation15 + $0xd4] sm:$0xf0]  ;;  %v2820_v54 = vld [vmem:[#allocation15 + $0xcc] sm:$0xf] }
 0x345   :  { %501 = vmatpush.bf16.msra.mxu1 %v2200_v4  ;;  %v2441_v7 = vld [vmem:[#allocation15 + $0xd8] sm:$0xf0]  ;;  %v2407_v4 = vld [vmem:[#allocation15 + $0x88] sm:$0xf] }
 0x346   :  { %525 = vmatpush.bf16.msra.mxu3 %v2248_v59  ;;  %538 = vmatpush.bf16.msrb.mxu0 %v2252_v58  ;;  %v2440_v59 = vor.u32 %v2822_v63, %v2439_v45  ;;  %v2444_v58 = vor.u32 %v2820_v54, %v2441_v7  ;;  %v2380_v45 = vor.u32 %v2804_v42, %v2377_v43  ;;  %v2353_v63 = vld [vmem:[#allocation15 + $0x30] sm:$0xf0]  ;;  %v2559_v42 = vld [vmem:[#allocation16 + $0xc0] sm:$0xf] }
 0x349   :  { %502 = vmatpush.bf16.msra.mxu1 %v2180_v56  ;;  %v2810_v56 = vld [vmem:[#allocation15 + $0x74] sm:$0xf0] }
 0x34a   :  { %526 = vmatpush.bf16.msra.mxu3 %v2228_v0  ;;  %539 = vmatpush.bf16.msrb.mxu0 %v2232_v51  ;;  %v2425_v0 = vld [vmem:[#allocation15 + $0xb8] sm:$0xf0]  ;;  %v2424_v51 = vor.u32 %v2818_v62, %v2423_v61  ;;  %v2392_v5 = vor.u32 %v2810_v56, %v2391_v19 }
 0x34b   :  { %1054 = vperm.xlu2 %2922, %v964_v15   ;;  %v2223_v15 = vld [vmem:[#allocation13 + $0x58] sm:$0xf]  ;;  %v2428_v53 = vor.u32 %v2816_v17, %v2425_v0  ;;  %v2361_v61 = vld [vmem:[#allocation15 + $0x38] sm:$0xf0]  ;;  %v2795_v17 = vld [vmem:[#allocation15 + $0x4] sm:$0xf] }
 0x34c   :  { %1049 = vperm.xlu0 %2923, %v963_v24   ;;  %v2768_v24 = vld [vmem:[#allocation13 + $0x68] sm:$0xf0]  ;;  %503 = vmatmul.bf16.vlgmr.msra.gmra.mxu1 %v3537_v25  ;;  %v2337_v0 = vld [vmem:[#allocation15 + $0x10] sm:$0xf0]  ;;  %v2345_v19 = vld [vmem:[#allocation15 + $0x18] sm:$0xf0] }
 0x34d   :  { %1294 = vmatpush.bf16.msrb.mxu1 %v2448_v37 }
 0x34e   :  { %527 = vmatpush.bf16.msra.mxu3 %v2208_v47  ;;  %540 = vmatpush.bf16.msrb.mxu0 %v2212_v10  ;;  %v2409_v47 = vld [vmem:[#allocation15 + $0x98] sm:$0xf0]  ;;  %v2408_v10 = vor.u32 %v2814_v8, %v2407_v4 }
 0x34f   :  { %v2412_v11 = vor.u32 %v2812_v60, %v2409_v47  ;;  %v2343_v60 = vld [vmem:[#allocation15 + $0x8] sm:$0xf]  ;;  %v2798_v47 = vld [vmem:[#allocation15 + $0x14] sm:$0xf0] }
 0x351   :  { %1295 = vmatpush.bf16.msrb.mxu1 %v2432_v55  ;;  %v2799_v55 = vld [vmem:[#allocation15 + $0x24] sm:$0xf] }
 0x352   :  { %528 = vmatpush.bf16.msra.mxu3 %v2188_v33  ;;  %541 = vmatpush.bf16.msrb.mxu0 %v2192_v34  ;;  %v2803_v33 = vld [vmem:[#allocation15 + $0x44] sm:$0xf]  ;;  %v2369_v34 = vld [vmem:[#allocation15 + $0x50] sm:$0xf0]  ;;  %v2356_v7 = vor.u32 %v2799_v55, %v2353_v63 }
 0x353   :  { %v2372_v37 = vor.u32 %v2803_v33, %v2369_v34 }
 0x354   :  { %1059 = vperm.xlu0 %2923, %v965_v26   ;;  %v2224_v26 = vor.u32 %v2768_v24, %v2223_v15  ;;  %v2815_v15 = vld [vmem:[#allocation15 + $0xa4] sm:$0xf]  ;;  %v2417_v24 = vld [vmem:[#allocation15 + $0xb0] sm:$0xf0] }
 0x355   :  { %529 = vmatmul.bf16.vlgmr.msra.gmra.mxu3 %v3537_v25  ;;  %542 = vmatmul.bf16.vlgmr.msrb.gmra.mxu0 %v3537_v25 }
 0x356   :  { %513 = vmatpush.bf16.msra.mxu2 %v2224_v26  ;;  %1320 = vmatpush.bf16.msrb.mxu3 %v2456_v40  ;;  %v2420_v26 = vor.u32 %v2815_v15, %v2417_v24  ;;  %v2368_v40 = vor.u32 %v2805_v39, %v2367_v38  ;;  %v2359_v15 = vld [vmem:[#allocation15 + $0x28] sm:$0xf] }
 0x357   :  { %1333 = vmatpush.bf16.msra.mxu0 %v2460_v41  ;;  %1296 = vmatpush.bf16.msrb.mxu1 %v2416_v30  ;;  %v2806_v41 = vld [vmem:[#allocation15 + $0x54] sm:$0xf0]  ;;  %v2360_v62 = vor.u32 %v2802_v9, %v2359_v15  ;;  %v2852_v9 = vld [vmem:[#allocation16 + $0xcc] sm:$0xf] }
 0x358   :  { %v2376_v20 = vor.u32 %v2806_v41, %v2375_v23  ;;  %v2585_v41 = vld [vmem:[#allocation16 + $0xf8] sm:$0xf0] }
 0x35a   :  { %514 = vmatpush.bf16.msra.mxu2 %v2204_v22  ;;  %1321 = vmatpush.bf16.msrb.mxu3 %v2440_v59  ;;  %v2401_v22 = vld [vmem:[#allocation15 + $0x90] sm:$0xf0]  ;;  %v2351_v59 = vld [vmem:[#allocation15 + $0x20] sm:$0xf] }
 0x35b   :  { %1334 = vmatpush.bf16.msra.mxu0 %v2444_v58  ;;  %v2404_v27 = vor.u32 %v2811_v2, %v2401_v22  ;;  %v2801_v58 = vld [vmem:[#allocation15 + $0x2c] sm:$0xf0]  ;;  %v2364_v2 = vor.u32 %v2800_v48, %v2361_v61  ;;  %v2340_v22 = vor.u32 %v2795_v17, %v2337_v0  ;;  %v2569_v48 = vld [vmem:[#allocation16 + $0xd8] sm:$0xf0]  ;;  %v2847_v17 = vld [vmem:[#allocation16 + $0xa4] sm:$0xf] }
 0x35e   :  { %515 = vmatpush.bf16.msra.mxu2 %v2184_v16  ;;  %1322 = vmatpush.bf16.msrb.mxu3 %v2424_v51  ;;  %v2388_v16 = vor.u32 %v2807_v12, %v2385_v13  ;;  %v971_v51 = vld [vmem:[#allocation10 + $0x28] sm:$0xff] }
 0x35f   :  { %1335 = vmatpush.bf16.msra.mxu0 %v2428_v53  ;;  %v970_v53 = vld [vmem:[#allocation10 + $0x20] sm:$0xff]  ;;  %v975_v12 = vld [vmem:[#allocation10 + $0x48] sm:$0xff] }
 0x361   :  { %516 = vmatmul.bf16.vlgmr.msra.gmra.mxu2 %v3537_v25  ;;  %v2399_v25 = vld [vmem:[#allocation15 + $0x80] sm:$0xf] }
 0x362   :  { %1307 = vmatpush.bf16.msrb.mxu2 %v2452_v52  ;;  %v2400_v6 = vor.u32 %v2813_v31, %v2399_v25  ;;  %v2809_v52 = vld [vmem:[#allocation15 + $0x6c] sm:$0xf0]  ;;  %1323 = vmatpush.bf16.msrb.mxu3 %v2408_v10  ;;  %v547_v31 = vld [vmem:[#allocation4] sm:$0xff] }
 0x363   :  { %1336 = vmatpush.bf16.msra.mxu0 %v2412_v11  ;;  %v2384_v14 = vor.u32 %v2809_v52, %v2383_v18  ;;  %v2797_v25 = vld [vmem:[#allocation15 + $0xc] sm:$0xf0]  ;;  %v548_v8 = vpack.c.bf16 %v547_v31, %v547_v31  ;;  %v2796_v10 = vld [vmem:[#allocation15 + $0xc] sm:$0xf]  ;;  %v973_v11 = vld [vmem:[#allocation10 + $0x38] sm:$0xff]  ;;  %v2344_v52 = vor.u32 %v2798_v47, %v2343_v60 }
 0x364   :  { %1297 = vmatpush.bf16.msrb.mxu1 %v2400_v6  ;;  %v974_v18 = vld [vmem:[#allocation10 + $0x40] sm:$0xff]  ;;  %v2348_v56 = vor.u32 %v2796_v10, %v2345_v19  ;;  %v2850_v31 = vld [vmem:[#allocation16 + $0xb4] sm:$0xf0] }
 0x366   :  { %1308 = vmatpush.bf16.msrb.mxu2 %v2436_v1  ;;  %1324 = vmatpush.bf16.msrb.mxu3 %v2392_v5 }
 0x367   :  { %1337 = vmatpush.bf16.msra.mxu0 %v2396_v57  ;;  %v2583_v57 = vld [vmem:[#allocation16 + $0xe8] sm:$0xf] }
 0x368   :  { %1298 = vmatpush.bf16.msrb.mxu1 %v2384_v14 }
 0x36a   :  { %1309 = vmatpush.bf16.msrb.mxu2 %v2420_v26  ;;  %1325 = vmatpush.bf16.msrb.mxu3 %v2376_v20  ;;  %v2352_v26 = vor.u32 %v2801_v58, %v2351_v59  ;;  %v2851_v20 = vld [vmem:[#allocation16 + $0xc4] sm:$0xf]  ;;  %v2854_v59 = vld [vmem:[#allocation16 + $0xd4] sm:$0xf0]  ;;  %v976_v58 = vld [vmem:[#allocation10 + $0x50] sm:$0xff] }
 0x36b   :  { %1338 = vmatpush.bf16.msra.mxu0 %v2380_v45 }
 0x36c   :  { %1299 = vmatpush.bf16.msrb.mxu1 %v2368_v40  ;;  %v2856_v40 = vld [vmem:[#allocation16 + $0xec] sm:$0xf] }
 0x36e   :  { %1310 = vmatpush.bf16.msrb.mxu2 %v2404_v27  ;;  %v2335_v27 = vld [vmem:[#allocation15] sm:$0xf]  ;;  %1326 = vmatpush.bf16.msrb.mxu3 %v2360_v62  ;;  %v2849_v62 = vld [vmem:[#allocation16 + $0xac] sm:$0xf0] }
 0x36f   :  { %1339 = vmatpush.bf16.msra.mxu0 %v2364_v2  ;;  %v2336_v6 = vor.u32 %v2797_v25, %v2335_v27  ;;  %v2551_v27 = vld [vmem:[#allocation16 + $0xa8] sm:$0xf] }
 0x370   :  { %1300 = vmatpush.bf16.msrb.mxu1 %v2352_v26 }
 0x372   :  { %1311 = vmatpush.bf16.msrb.mxu2 %v2388_v16  ;;  %v972_v16 = vld [vmem:[#allocation10 + $0x30] sm:$0xff]  ;;  %1327 = vmatpush.bf16.msrb.mxu3 %v2344_v52 }
 0x373   :  { %1340 = vmatpush.bf16.msra.mxu0 %v2348_v56 }
 0x374   :  { %1301 = vmatpush.bf16.msrb.mxu1 %v2336_v6  ;;  %v2553_v6 = vld [vmem:[#allocation16 + $0xb8] sm:$0xf0] }
 0x375   :  { %v3775_v49 = vpop.permute.xlu2 %989  ;;  %1328 = vmatmul.bf16.vlgmr.msrb.gmra.mxu3 %v548_v8 }
 0x376   :  { %1312 = vmatpush.bf16.msrb.mxu2 %v2372_v37  ;;  %v2858_v37 = vld [vmem:[#allocation16 + $0xf4] sm:$0xf0]  ;;  %1341 = vmatmul.bf16.vlgmr.msra.gmra.mxu0 %v548_v8 }
 0x377   :  { %v2584_v23 = vor.u32 %v2858_v37, %v2583_v57  ;;  %1302 = vmatmul.bf16.vlgmr.msrb.gmra.mxu1 %v548_v8 }
 0x379   :  { %1611 = vmatpush.bf16.msra.mxu3 %v2584_v23  ;;  %v2839_v23 = vld [vmem:[#allocation16 + $0x64] sm:$0xf] }
 0x37a   :  { %1313 = vmatpush.bf16.msrb.mxu2 %v2356_v7  ;;  %v2567_v7 = vld [vmem:[#allocation16 + $0xc8] sm:$0xf] }
 0x37b   :  { %v2568_v61 = vor.u32 %v2854_v59, %v2567_v7 }
 0x37d   :  { %v3779_v36 = vpop.permute.xlu2 %999  ;;  %1612 = vmatpush.bf16.msra.mxu3 %v2568_v61  ;;  %v2497_v61 = vld [vmem:[#allocation16 + $0x50] sm:$0xf0] }
 0x37e   :  { %v1065_v54 = vmul.f32 %v3779_v36, %v969_v44  ;;  %v967_v36 = vld [vmem:[#allocation10 + $0x8] sm:$0xff]  ;;  %1314 = vmatpush.bf16.msrb.mxu2 %v2340_v22  ;;  %v2545_v22 = vld [vmem:[#allocation16 + $0xb0] sm:$0xf0] }
 0x37f   :  { %v1063_v14 = vmul.f32 %v3775_v49, %v967_v36  ;;  %v2548_v25 = vor.u32 %v2847_v17, %v2545_v22 }
 0x381   :  { %1315 = vmatmul.bf16.vlgmr.msrb.gmra.mxu2 %v548_v8  ;;  %v2552_v8 = vor.u32 %v2850_v31, %v2551_v27 }
 0x383   :  { %1613 = vmatpush.bf16.msra.mxu3 %v2552_v8  ;;  %v2833_v8 = vld [vmem:[#allocation16 + $0x2c] sm:$0xf0] }
 0x385   :  { %v3785_v3 = vpop.permute.xlu2 %1009 }
 0x386   :  { %v1067_v5 = vmul.f32 %v3785_v3, %v971_v51 }
 0x38d   :  { %v3789_v1 = vpop.permute.xlu2 %1019  ;;  %v1035_v0 = vpop.permute.xlu1 %1034 }
 0x38e   :  { %v3777_v32 = vpop.permute.xlu0 %984  ;;  %v1069_v45 = vmul.f32 %v3789_v1, %v973_v11  ;;  %v2543_v1 = vld [vmem:[#allocation16 + $0xa0] sm:$0xf]  ;;  %v1072_v11 = vmul.f32 %v1035_v0, %v976_v58 }
 0x38f   :  { %v2544_v2 = vor.u32 %v2849_v62, %v2543_v1  ;;  %v2838_v1 = vld [vmem:[#allocation16 + $0x54] sm:$0xf0] }
 0x395   :  { %v1030_v33 = vpop.permute.xlu2 %1029 }
 0x396   :  { %v995_v46 = vpop.permute.xlu0 %994  ;;  %v1071_v55 = vmul.f32 %v1030_v33, %v975_v12  ;;  %v2844_v33 = vld [vmem:[#allocation16 + $0x8c] sm:$0xf] }
 0x397   :  { %v1064_v50 = vmul.f32 %v995_v46, %v968_v35  ;;  %v966_v46 = vld [vmem:[#allocation10] sm:$0xff]  ;;  %v2577_v35 = vld [vmem:[#allocation16 + $0xf0] sm:$0xf0] }
 0x398   :  { %v1062_v4 = vmul.f32 %v3777_v32, %v966_v46  ;;  %v2575_v32 = vld [vmem:[#allocation16 + $0xe0] sm:$0xf]  ;;  %v2580_v49 = vor.u32 %v2855_v29, %v2577_v35  ;;  %v2572_v46 = vor.u32 %v2852_v9, %v2569_v48  ;;  %v2837_v9 = vld [vmem:[#allocation16 + $0x4c] sm:$0xf0] }
 0x399   :  { %v3792_v30 = vadd.f32 %v1065_v54, %v1064_v50  ;;  %v2576_v44 = vor.u32 %v2857_v28, %v2575_v32  ;;  %v2853_v50 = vld [vmem:[#allocation16 + $0xcc] sm:$0xf0]  ;;  %v2561_v54 = vld [vmem:[#allocation16 + $0xd0] sm:$0xf0]  ;;  %v2535_v28 = vld [vmem:[#allocation16 + $0x88] sm:$0xf] }
 0x39a   :  { %v3799_v38 = vadd.f32 %v1063_v14, %v1062_v4  ;;  %1598 = vmatpush.bf16.msra.mxu2 %v2580_v49  ;;  %v2560_v63 = vor.u32 %v2853_v50, %v2559_v42  ;;  %v2564_v26 = vor.u32 %v2851_v20, %v2561_v54  ;;  %v2848_v4 = vld [vmem:[#allocation16 + $0xac] sm:$0xf]  ;;  %v2529_v32 = vld [vmem:[#allocation16 + $0x90] sm:$0xf0]  ;;  %v2841_v49 = vld [vmem:[#allocation16 + $0x6c] sm:$0xf0] }
 0x39b   :  { %v1086_v13 = vrot.slane %v3792_v30, 4  ;;  %1585 = vmatpush.bf16.msra.mxu1 %v2576_v44  ;;  %v2556_v10 = vor.u32 %v2848_v4, %v2553_v6  ;;  %v978_v44 = vld [vmem:[#allocation10 + $0x60] sm:$0xff]  ;;  %v2521_v54 = vld [vmem:[#allocation16 + $0x78] sm:$0xf0] }
 0x39c   :  { %v1079_v36 = vrot.slane %v3799_v38, 4 }
 0x39d   :  { %v3803_v15 = vadd.f32 %v1086_v13, %v3792_v30  ;;  %v977_v30 = vld [vmem:[#allocation10 + $0x58] sm:$0xff]  ;;  %v2527_v13 = vld [vmem:[#allocation16 + $0x80] sm:$0xf]  ;;  %v1045_v35 = vpop.permute.xlu2 %1044 }
 0x39e   :  { %v3787_v21 = vpop.permute.xlu0 %1004  ;;  %1599 = vmatpush.bf16.msra.mxu2 %v2564_v26  ;;  %v2495_v26 = vld [vmem:[#allocation16 + $0x40] sm:$0xf]  ;;  %v1074_v17 = vmul.f32 %v1045_v35, %v978_v44 }
 0x39f   :  { %v1066_v34 = vmul.f32 %v3787_v21, %v970_v53  ;;  %v2588_v21 = vor.u32 %v2856_v40, %v2585_v41  ;;  %1586 = vmatpush.bf16.msra.mxu1 %v2560_v63  ;;  %v1088_v60 = vrot.slane %v3803_v15, 2  ;;  %v1080_v40 = vadd.f32 %v1079_v36, %v3799_v38  ;;  %v2840_v63 = vld [vmem:[#allocation16 + $0x6c] sm:$0xf]  ;;  %v2835_v38 = vld [vmem:[#allocation16 + $0x44] sm:$0xf] }
 0x3a0   :  { %v2524_v48 = vor.u32 %v2840_v63, %v2521_v54  ;;  %v2496_v27 = vor.u32 %v2837_v9, %v2495_v26  ;;  %v2500_v6 = vor.u32 %v2835_v38, %v2497_v61 }
 0x3a1   :  { %1624 = vmatpush.bf16.msrb.mxu0 %v2588_v21  ;;  %v2842_v21 = vld [vmem:[#allocation16 + $0x74] sm:$0xf0]  ;;  %v1081_v62 = vrot.slane %v1080_v40, 2 }
 0x3a2   :  { %1600 = vmatpush.bf16.msra.mxu2 %v2548_v25  ;;  %v2479_v25 = vld [vmem:[#allocation16 + $0x20] sm:$0xf] }
 0x3a3   :  { %1587 = vmatpush.bf16.msra.mxu1 %v2544_v2 }
 0x3a5   :  { %1625 = vmatpush.bf16.msrb.mxu0 %v2572_v46  ;;  %v2503_v46 = vld [vmem:[#allocation16 + $0x48] sm:$0xf] }
 0x3a6   :  { %v1015_v24 = vpop.permute.xlu0 %1014 }
 0x3a7   :  { %v1068_v43 = vmul.f32 %v1015_v24, %v972_v16  ;;  %v1092_v24 = vadd.f32 %v1067_v5, %v1066_v34  ;;  %v2845_v16 = vld [vmem:[#allocation16 + $0x8c] sm:$0xf0]  ;;  %v2846_v5 = vld [vmem:[#allocation16 + $0x94] sm:$0xf0]  ;;  %v2537_v34 = vld [vmem:[#allocation16 + $0x98] sm:$0xf0] }
 0x3a8   :  { %v2528_v56 = vor.u32 %v2845_v16, %v2527_v13  ;;  %v2536_v37 = vor.u32 %v2846_v5, %v2535_v28  ;;  %v2540_v42 = vor.u32 %v2844_v33, %v2537_v34  ;;  %v2481_v13 = vld [vmem:[#allocation16 + $0x30] sm:$0xf0]  ;;  %v2487_v16 = vld [vmem:[#allocation16 + $0x28] sm:$0xf]  ;;  %v981_v5 = vld [vmem:[#allocation10 + $0x78] sm:$0xff]  ;;  %v2480_v33 = vor.u32 %v2833_v8, %v2479_v25 }
 0x3a9   :  { %v1099_v51 = vadd.f32 %v1069_v45, %v1068_v43  ;;  %v1093_v47 = vrot.slane %v1092_v24, 4  ;;  %1626 = vmatpush.bf16.msrb.mxu0 %v2556_v10  ;;  %v2513_v43 = vld [vmem:[#allocation16 + $0x70] sm:$0xf0]  ;;  %v979_v45 = vld [vmem:[#allocation10 + $0x68] sm:$0xff]  ;;  %v2831_v10 = vld [vmem:[#allocation16 + $0x24] sm:$0xf] }
 0x3aa   :  { %1588 = vmatpush.bf16.msra.mxu1 %v2528_v56  ;;  %1614 = vmatpush.bf16.msra.mxu3 %v2536_v37  ;;  %v2516_v59 = vor.u32 %v2839_v23, %v2513_v43  ;;  %v980_v56 = vld [vmem:[#allocation10 + $0x70] sm:$0xff]  ;;  %v2484_v44 = vor.u32 %v2831_v10, %v2481_v13  ;;  %v2830_v43 = vld [vmem:[#allocation16 + $0x14] sm:$0xf0] }
 0x3ab   :  { %v1100_v52 = vrot.slane %v1099_v51, 4  ;;  %v1094_v41 = vadd.f32 %v1093_v47, %v1092_v24  ;;  %v2504_v47 = vor.u32 %v2838_v1, %v2503_v46  ;;  %v2829_v37 = vld [vmem:[#allocation16 + $0xc] sm:$0xf0] }
 0x3ad   :  { %v1101_v50 = vadd.f32 %v1100_v52, %v1099_v51  ;;  %1627 = vmatpush.bf16.msrb.mxu0 %v2540_v42  ;;  %v1095_v0 = vrot.slane %v1094_v41, 2  ;;  %v2836_v51 = vld [vmem:[#allocation16 + $0x4c] sm:$0xf]  ;;  %v2471_v42 = vld [vmem:[#allocation16 + $0x8] sm:$0xf] }
 0x3ae   :  { %v1025_v39 = vpop.permute.xlu0 %1024  ;;  %v2832_v52 = vld [vmem:[#allocation16 + $0x2c] sm:$0xf]  ;;  %v2472_v38 = vor.u32 %v2830_v43, %v2471_v42 }
 0x3af   :  { %v1070_v3 = vmul.f32 %v1025_v39, %v974_v18  ;;  %v2843_v18 = vld [vmem:[#allocation16 + $0x84] sm:$0xf]  ;;  %v2511_v39 = vld [vmem:[#allocation16 + $0x60] sm:$0xf]  ;;  %v1102_v2 = vrot.slane %v1101_v50, 2 }
 0x3b0   :  { %v2532_v29 = vor.u32 %v2843_v18, %v2529_v32  ;;  %v2834_v18 = vld [vmem:[#allocation16 + $0x34] sm:$0xf0]  ;;  %v1055_v32 = vpop.permute.xlu2 %1054 }
 0x3b1   :  { %v1106_v53 = vadd.f32 %v1071_v55, %v1070_v3  ;;  %v2519_v3 = vld [vmem:[#allocation16 + $0x68] sm:$0xf]  ;;  %v2512_v55 = vor.u32 %v2841_v49, %v2511_v39  ;;  %1628 = vmatpush.bf16.msrb.mxu0 %v2524_v48  ;;  %v1103_v28 = vadd.f32 %v1102_v2, %v1101_v50  ;;  %v2488_v35 = vor.u32 %v2834_v18, %v2487_v16  ;;  %v2827_v39 = vld [vmem:[#allocation16 + $0x4] sm:$0xf] }
 0x3b2   :  { %1601 = vmatpush.bf16.msra.mxu2 %v2532_v29  ;;  %v2520_v58 = vor.u32 %v2842_v21, %v2519_v3  ;;  %v1076_v50 = vmul.f32 %v1055_v32, %v980_v56 }
 0x3b3   :  { %v1107_v19 = vrot.slane %v1106_v53, 4  ;;  %1589 = vmatpush.bf16.msra.mxu1 %v2512_v55  ;;  %v2473_v55 = vld [vmem:[#allocation16 + $0x18] sm:$0xf0]  ;;  %v1104_v63 = vrot.slane %v1103_v28, 1 }
 0x3b4   :  { %1615 = vmatpush.bf16.msra.mxu3 %v2520_v58 }
 0x3b5   :  { %v1108_v7 = vadd.f32 %v1107_v19, %v1106_v53  ;;  %v1089_v53 = vadd.f32 %v1088_v60, %v3803_v15  ;;  %v1082_v15 = vadd.f32 %v1081_v62, %v1080_v40  ;;  %v1096_v60 = vadd.f32 %v1095_v0, %v1094_v41  ;;  %v2489_v19 = vld [vmem:[#allocation16 + $0x38] sm:$0xf0]  ;;  %v2465_v41 = vld [vmem:[#allocation16 + $0x10] sm:$0xf0] }
 0x3b6   :  { %v1040_v12 = vpop.permute.xlu0 %1039  ;;  %1602 = vmatpush.bf16.msra.mxu2 %v2516_v59  ;;  %v2492_v40 = vor.u32 %v2832_v52, %v2489_v19  ;;  %v2468_v9 = vor.u32 %v2827_v39, %v2465_v41 }
 0x3b7   :  { %v1073_v14 = vmul.f32 %v1040_v12, %v977_v30  ;;  %v2505_v30 = vld [vmem:[#allocation16 + $0x58] sm:$0xf0]  ;;  %v1109_v31 = vrot.slane %v1108_v7, 2  ;;  %1590 = vmatpush.bf16.msra.mxu1 %v2496_v27  ;;  %v1083_v3 = vrot.slane %v1082_v15, 1  ;;  %v1097_v21 = vrot.slane %v1096_v60, 1 }
 0x3b8   :  { %v2508_v12 = vor.u32 %v2836_v51, %v2505_v30  ;;  %1616 = vmatpush.bf16.msra.mxu3 %v2504_v47 }
 0x3b9   :  { %v1113_v57 = vadd.f32 %v1073_v14, %v1072_v11  ;;  %v1090_v14 = vrot.slane %v1089_v53, 1  ;;  %v1110_v34 = vadd.f32 %v1109_v31, %v1108_v7  ;;  %v1098_v1 = vadd.f32 %v1097_v21, %v1096_v60 }
 0x3ba   :  { %1603 = vmatpush.bf16.msra.mxu2 %v2500_v6  ;;  %1629 = vmatpush.bf16.msrb.mxu0 %v2508_v12  ;;  %v1084_v62 = vadd.f32 %v1083_v3, %v1082_v15 }
 0x3bb   :  { %v1114_v20 = vrot.slane %v1113_v57, 4  ;;  %1591 = vmatpush.bf16.msra.mxu1 %v2480_v33  ;;  %v1091_v58 = vadd.f32 %v1090_v14, %v1089_v53  ;;  %v1111_v26 = vrot.slane %v1110_v34, 1 }
 0x3bc   :  { %1617 = vmatpush.bf16.msra.mxu3 %v2488_v35  ;;  %v1360_v25 = vpack.c.bf16 %v1084_v62, %v1084_v62 }
 0x3bd   :  { %v1115_v24 = vadd.f32 %v1114_v20, %v1113_v57  ;;  %v2463_v57 = vld [vmem:[#allocation16] sm:$0xf]  ;;  %v1112_v51 = vadd.f32 %v1111_v26, %v1110_v34  ;;  %v1361_v30 = vpack.c.bf16 %v1091_v58, %v1091_v58 }
 0x3be   :  { %v1050_v36 = vpop.permute.xlu0 %1049  ;;  %v2464_v59 = vor.u32 %v2829_v37, %v2463_v57  ;;  %1604 = vmatpush.bf16.msra.mxu2 %v2484_v44  ;;  %1630 = vmatpush.bf16.msrb.mxu0 %v2492_v40  ;;  %v1408_v13 = vunpack.c.l.b16 %v1360_v25  ;;  %v2888_v25 = vld [vmem:[#allocation19 + $0xec] sm:$0xf] }
 0x3bf   :  { %v1075_v22 = vmul.f32 %v1050_v36, %v979_v45  ;;  %v1116_v4 = vrot.slane %v1115_v24, 2  ;;  %v2828_v45 = vld [vmem:[#allocation16 + $0xc] sm:$0xf]  ;;  %v1364_v6 = vpack.c.bf16 %v1112_v51, %v1112_v51  ;;  %v1409_v47 = vunpack.c.l.b16 %v1361_v30  ;;  %v2708_v51 = vld [vmem:[#allocation19 + $0xf0] sm:$0xf0] }
 0x3c0   :  { %v2476_v46 = vor.u32 %v2828_v45, %v2473_v55  ;;  %1592 = vmatpush.bf16.msra.mxu1 %v2464_v59  ;;  %1618 = vmatpush.bf16.msra.mxu3 %v2472_v38  ;;  %v2714_v30 = vld [vmem:[#allocation19 + $0xe8] sm:$0xf] }
 0x3c1   :  { %v1120_v11 = vadd.f32 %v1075_v22, %v1074_v17  ;;  %v1117_v49 = vadd.f32 %v1116_v4, %v1115_v24  ;;  %v1105_v17 = vadd.f32 %v1104_v63, %v1103_v28  ;;  %v1362_v22 = vpack.c.bf16 %v1098_v1, %v1098_v1  ;;  %v2887_v1 = vld [vmem:[#allocation19 + $0xe4] sm:$0xf] }
 0x3c2   :  { %1605 = vmatpush.bf16.msra.mxu2 %v2468_v9  ;;  %1631 = vmatpush.bf16.msrb.mxu0 %v2476_v46  ;;  %v1412_v15 = vunpack.c.l.b16 %v1364_v6  ;;  %v1416_v60 = vsel %vm749_vm1, %v1409_v47, %v1408_v13  ;;  %v2889_v46 = vld [vmem:[#allocation19 + $0xec] sm:$0xf0]  ;;  %v2883_v13 = vld [vmem:[#allocation19 + $0xc4] sm:$0xf] }
 0x3c3   :  { %v1121_v29 = vrot.slane %v1120_v11, 4  ;;  %v1118_v24 = vrot.slane %v1117_v49, 1  ;;  %v1363_v31 = vpack.c.bf16 %v1105_v17, %v1105_v17 }
 0x3c5   :  { %v1122_v23 = vadd.f32 %v1121_v29, %v1120_v11  ;;  %v1119_v53 = vadd.f32 %v1118_v24, %v1117_v49  ;;  %v1410_v11 = vunpack.c.l.b16 %v1362_v22  ;;  %v1411_v16 = vunpack.c.l.b16 %v1363_v31  ;;  %v2716_v31 = vld [vmem:[#allocation19 + $0xf8] sm:$0xf0] }
 0x3c6   :  { %v1060_v20 = vpop.permute.xlu0 %1059  ;;  %v2711_v22 = vor.u32 %v2887_v1, %v2708_v51  ;;  %v2719_v6 = vor.u32 %v2888_v25, %v2716_v31  ;;  %v2650_v25 = vld [vmem:[#allocation19 + $0x68] sm:$0xf]  ;;  %v2874_v31 = vld [vmem:[#allocation19 + $0x74] sm:$0xf0] }
 0x3c7   :  { %v1123_v54 = vrot.slane %v1122_v23, 2  ;;  %v1077_v7 = vmul.f32 %v1060_v20, %v981_v5  ;;  %v1365_v8 = vpack.c.bf16 %v1119_v53, %v1119_v53  ;;  %v1417_v14 = vsel %vm751_vm2, %v1410_v11, %v1416_v60  ;;  %v2890_v53 = vld [vmem:[#allocation19 + $0xf4] sm:$0xf0] }
 0x3c8   :  { %v1418_v32 = vsel %vm753_vm3, %v1411_v16, %v1417_v14  ;;  %1920 = vmatpush.bf16.msrb.mxu2 %v2711_v22  ;;  %1946 = vmatpush.bf16.msra.mxu0 %v2719_v6  ;;  %v2692_v16 = vld [vmem:[#allocation19 + $0xd0] sm:$0xf0]  ;;  %v2700_v14 = vld [vmem:[#allocation19 + $0xd8] sm:$0xf0] }
 0x3c9   :  { %v1124_v48 = vadd.f32 %v1123_v54, %v1122_v23  ;;  %v1127_v61 = vadd.f32 %v1077_v7, %v1076_v50  ;;  %v1413_v52 = vunpack.c.l.b16 %v1365_v8  ;;  %v1419_v29 = vsel %vm755_vm4, %v1412_v15, %v1418_v32  ;;  %v504_v57 = vpop.f32.mrf.mxu1  ;;  %v3825_v54 = vld [vmem:[%s3907_s8] sm:$0xf]  ;;  %v2690_v8 = vld [vmem:[#allocation19 + $0xc0] sm:$0xf] }
 0x3ca   :  { %v1348_v59 = vperm.slane %v3825_v54, 0  ;;  %v1351_v26 = vperm.slane %v3825_v54, 3  ;;  %v1349_v38 = vperm.slane %v3825_v54, 1  ;;  %v2695_v60 = vor.u32 %v2883_v13, %v2692_v16  ;;  %v2867_v16 = vld [vmem:[#allocation19 + $0x44] sm:$0xf] }
 0x3cb   :  { %v1125_v0 = vrot.slane %v1124_v48, 1  ;;  %v1128_v36 = vrot.slane %v1127_v61, 4  ;;  %v1420_v33 = vsel %vm757_vm5, %v1413_v52, %v1419_v29  ;;  %v2886_v52 = vld [vmem:[#allocation19 + $0xd4] sm:$0xf0]  ;;  %v1350_v1 = vperm.slane %v3825_v54, 2 }
 0x3cc   :  { %1921 = vmatpush.bf16.msrb.mxu2 %v2695_v60  ;;  %v2652_v54 = vld [vmem:[#allocation19 + $0x78] sm:$0xf0] }
 0x3cd   :  { %v1129_v2 = vadd.f32 %v1128_v36, %v1127_v61  ;;  %v1126_v27 = vadd.f32 %v1125_v0, %v1124_v48  ;;  %v2706_v61 = vld [vmem:[#allocation19 + $0xe0] sm:$0xf] }
 0x3ce   :  { %v2707_v36 = vor.u32 %v2889_v46, %v2706_v61 }
 0x3cf   :  { %v1130_v4 = vrot.slane %v1129_v2, 2  ;;  %v1366_v12 = vpack.c.bf16 %v1126_v27, %v1126_v27  ;;  %v2715_v27 = vor.u32 %v2890_v53, %v2714_v30  ;;  %v2642_v30 = vld [vmem:[#allocation19 + $0x60] sm:$0xf]  ;;  %v2873_v53 = vld [vmem:[#allocation19 + $0x6c] sm:$0xf0] }
 0x3d0   :  { %1907 = vmatpush.bf16.msrb.mxu1 %v2707_v36  ;;  %v2643_v22 = vor.u32 %v2873_v53, %v2642_v30 }
 0x3d1   :  { %v1131_v10 = vadd.f32 %v1130_v4, %v1129_v2  ;;  %v1414_v56 = vunpack.c.l.b16 %v1366_v12  ;;  %v506_v23 = vpop.f32.mrf.mxu1  ;;  %1933 = vmatpush.bf16.msrb.mxu3 %v2715_v27  ;;  %v2644_v27 = vld [vmem:[#allocation19 + $0x70] sm:$0xf0] }
 0x3d2   :  { %v543_v37 = vpop.f32.mrf.mxu0  ;;  %v2682_v23 = vld [vmem:[#allocation19 + $0xa8] sm:$0xf] }
 0x3d3   :  { %v1132_v18 = vrot.slane %v1131_v10, 1  ;;  %v1421_v34 = vsel %vm759_vm6, %v1414_v56, %v1420_v33  ;;  %v2674_v33 = vld [vmem:[#allocation19 + $0xa0] sm:$0xf] }
 0x3d5   :  { %v1133_v19 = vadd.f32 %v1132_v18, %v1131_v10  ;;  %v2885_v10 = vld [vmem:[#allocation19 + $0xcc] sm:$0xf0]  ;;  %v2698_v18 = vld [vmem:[#allocation19 + $0xc8] sm:$0xf] }
 0x3d6   :  { %v2691_v12 = vor.u32 %v2885_v10, %v2690_v8  ;;  %v2651_v8 = vor.u32 %v2874_v31, %v2650_v25 }
 0x3d7   :  { %v1367_v28 = vpack.c.bf16 %v1133_v19, %v1133_v19  ;;  %v2884_v19 = vld [vmem:[#allocation19 + $0xcc] sm:$0xf] }
 0x3d8   :  { %v3818_v49 = vpop.f32.mrf.mxu3  ;;  %1908 = vmatpush.bf16.msrb.mxu1 %v2691_v12  ;;  %v2703_v29 = vor.u32 %v2884_v19, %v2700_v14  ;;  %v2869_v12 = vld [vmem:[#allocation19 + $0x4c] sm:$0xf0]  ;;  %v2870_v19 = vld [vmem:[#allocation19 + $0x54] sm:$0xf0] }
 0x3d9   :  { %v1415_v5 = vunpack.c.l.b16 %v1367_v28  ;;  %v2699_v28 = vor.u32 %v2886_v52, %v2698_v18  ;;  %v2628_v18 = vld [vmem:[#allocation19 + $0x50] sm:$0xf0] }
 0x3da   :  { %v545_v40 = vpop.f32.mrf.mxu0  ;;  %1947 = vmatpush.bf16.msra.mxu0 %v2703_v29  ;;  %v2868_v29 = vld [vmem:[#allocation19 + $0x4c] sm:$0xf] }
 0x3db   :  { %v1422_v44 = vsel %vm761_vm7, %v1415_v5, %v1421_v34  ;;  %v2881_v34 = vld [vmem:[#allocation19 + $0xac] sm:$0xf0]  ;;  %1934 = vmatpush.bf16.msrb.mxu3 %v2699_v28 }
 0x3dc   :  { %v1423_v35 = vpack.c.b16 %v1422_v44, %v1422_v44  ;;  %v2879_v44 = vld [vmem:[#allocation19 + $0xa4] sm:$0xf] }
 0x3de   :  { %1593 = vmatmul.bf16.vlgmr.msra.gmra.mxu1 %v1423_v35  ;;  %1606 = vmatmul.bf16.vlgmr.msra.gmra.mxu2 %v1423_v35 }
 0x3df   :  { %1619 = vmatmul.bf16.vlgmr.msra.gmra.mxu3 %v1423_v35  ;;  %1632 = vmatmul.bf16.vlgmr.msrb.gmra.mxu0 %v1423_v35 }
 0x3e0   :  { %v532_v42 = vpop.f32.mrf.mxu3 }
 0x3e1   :  { %v2880_v42 = vld [vmem:[#allocation19 + $0xac] sm:$0xf] }
 0x3e4   :  { %v517_v39 = vpop.f32.mrf.mxu2 }
 0x3ec   :  { %v519_v41 = vpop.f32.mrf.mxu2 }
 0x3ed   :  { %v2882_v41 = vld [vmem:[#allocation19 + $0xb4] sm:$0xf0] }
 0x3f3   :  { %v1342_v3 = vpop.f32.mrf.mxu0 }
 0x3f4   :  { %v1303_v43 = vpop.f32.mrf.mxu1  ;;  %v1343_v58 = vadd.f32 %v1342_v3, %v543_v37  ;;  %v2675_v37 = vor.u32 %v2881_v34, %v2674_v33  ;;  %v2610_v33 = vld [vmem:[#allocation19 + $0x20] sm:$0xf] }
 0x3f5   :  { %v1304_v7 = vadd.f32 %v1303_v43, %v504_v57  ;;  %v2684_v43 = vld [vmem:[#allocation19 + $0xb8] sm:$0xf0] }
 0x3f6   :  { %v1359_v48 = vadd.f32 %v1351_v26, %v1343_v58  ;;  %1909 = vmatpush.bf16.msrb.mxu1 %v2675_v37  ;;  %v2660_v26 = vld [vmem:[#allocation19 + $0x90] sm:$0xf0] }
 0x3f7   :  { %v1356_v9 = vadd.f32 %v1348_v59, %v1304_v7 }
 0x3f8   :  { %v3820_v50 = vpop.f32.mrf.mxu3 }
 0x3f9   :  { %v1330_v61 = vadd.f32 %v3820_v50, %v3818_v49 }
 0x3fb   :  { %v1344_v45 = vpop.f32.mrf.mxu0 }
 0x3fc   :  { %v1305_v20 = vpop.f32.mrf.mxu1  ;;  %v2658_v45 = vld [vmem:[#allocation19 + $0x80] sm:$0xf] }
 0x3fd   :  { %v2687_v20 = vor.u32 %v2880_v42, %v2684_v43  ;;  %v2866_v42 = vld [vmem:[#allocation19 + $0x34] sm:$0xf0]  ;;  %v2864_v43 = vld [vmem:[#allocation19 + $0x2c] sm:$0xf] }
 0x3ff   :  { %1948 = vmatpush.bf16.msra.mxu0 %v2687_v20 }
 0x400   :  { %v1331_v63 = vpop.f32.mrf.mxu3 }
 0x401   :  { %v2875_v63 = vld [vmem:[#allocation19 + $0x84] sm:$0xf] }
 0x404   :  { %v1316_v21 = vpop.f32.mrf.mxu2 }
 0x405   :  { %v1317_v62 = vadd.f32 %v1316_v21, %v517_v39  ;;  %v2676_v39 = vld [vmem:[#allocation19 + $0xb0] sm:$0xf0]  ;;  %v2683_v21 = vor.u32 %v2882_v41, %v2682_v23  ;;  %v2618_v23 = vld [vmem:[#allocation19 + $0x28] sm:$0xf] }
 0x406   :  { %v2679_v40 = vor.u32 %v2879_v44, %v2676_v39  ;;  %v2612_v39 = vld [vmem:[#allocation19 + $0x30] sm:$0xf0]  ;;  %v2619_v20 = vor.u32 %v2866_v42, %v2618_v23 }
 0x407   :  { %v1357_v11 = vadd.f32 %v1349_v38, %v1317_v62  ;;  %1935 = vmatpush.bf16.msrb.mxu3 %v2683_v21  ;;  %v2663_v38 = vor.u32 %v2875_v63, %v2660_v26  ;;  %v2861_v63 = vld [vmem:[#allocation19 + $0xc] sm:$0xf0]  ;;  %v2859_v26 = vld [vmem:[#allocation19 + $0x4] sm:$0xf] }
 0x408   :  { %1922 = vmatpush.bf16.msrb.mxu2 %v2679_v40  ;;  %v2897_v23 = vld [vmem:[#allocation21 + $0x30] sm:$0xff] }
 0x40c   :  { %v1318_v55 = vpop.f32.mrf.mxu2  ;;  %1923 = vmatpush.bf16.msrb.mxu2 %v2663_v38  ;;  %v2602_v38 = vld [vmem:[#allocation19 + $0x8] sm:$0xf] }
 0x40d   :  { %v2877_v55 = vld [vmem:[#allocation19 + $0x8c] sm:$0xf0] }
 0x40e   :  { %v2659_v58 = vor.u32 %v2877_v55, %v2658_v45  ;;  %v2620_v45 = vld [vmem:[#allocation19 + $0x38] sm:$0xf0]  ;;  %v2594_v55 = vld [vmem:[#allocation19] sm:$0xf] }
 0x410   :  { %1910 = vmatpush.bf16.msrb.mxu1 %v2659_v58  ;;  %v2623_v58 = vor.u32 %v2864_v43, %v2620_v45 }
 0x414   :  { %1911 = vmatpush.bf16.msrb.mxu1 %v2643_v22 }
 0x45b   :  { %v1594_v24 = vpop.f32.mrf.mxu1 }
 0x45c   :  { %v1637_v17 = vadd.f32 %v1594_v24, %v1356_v9  ;;  %v1633_v0 = vpop.f32.mrf.mxu0  ;;  %v2666_v9 = vld [vmem:[#allocation19 + $0x88] sm:$0xf]  ;;  %v2878_v24 = vld [vmem:[#allocation19 + $0x94] sm:$0xf0] }
 0x45d   :  { %v1640_v2 = vadd.f32 %v1633_v0, %v1359_v48  ;;  %v2876_v48 = vld [vmem:[#allocation19 + $0x8c] sm:$0xf]  ;;  %v2667_v36 = vor.u32 %v2878_v24, %v2666_v9  ;;  %v2596_v9 = vld [vmem:[#allocation19 + $0x10] sm:$0xf0] }
 0x45e   :  { %v2589_v4 = vmul.f32 -1.442695, %v1637_v17  ;;  %v2668_v17 = vld [vmem:[#allocation19 + $0x98] sm:$0xf0] }
 0x45f   :  { %v2591_v47 = vmul.f32 -1.442695, %v1640_v2  ;;  %v2671_v51 = vor.u32 %v2876_v48, %v2668_v17  ;;  %v2871_v2 = vld [vmem:[#allocation19 + $0x64] sm:$0xf]  ;;  %1936 = vmatpush.bf16.msrb.mxu3 %v2667_v36  ;;  %v2604_v17 = vld [vmem:[#allocation19 + $0x18] sm:$0xf0] }
 0x460   :  { %2993 = vpow2.f32 %v2589_v4  ;;  %v2647_v50 = vor.u32 %v2871_v2, %v2644_v27  ;;  %v2872_v4 = vld [vmem:[#allocation19 + $0x6c] sm:$0xf] }
 0x461   :  { %2995 = vpow2.f32 %v2591_v47  ;;  %v1607_v15 = vpop.f32.mrf.mxu2  ;;  %1949 = vmatpush.bf16.msra.mxu0 %v2671_v51  ;;  %v1358_v47 = vadd.f32 %v1350_v1, %v1330_v61  ;;  %v2655_v10 = vor.u32 %v2872_v4, %v2652_v54  ;;  %v2595_v61 = vor.u32 %v2861_v63, %v2594_v55  ;;  %v2862_v1 = vld [vmem:[#allocation19 + $0x14] sm:$0xf0]  ;;  %v2895_v55 = vld [vmem:[#allocation21 + $0x20] sm:$0xff] }
 0x462   :  { %v1638_v56 = vadd.f32 %v1607_v15, %v1357_v11  ;;  %v3830_v32 = vpop.f32.mrf.mxu3  ;;  %v2626_v11 = vld [vmem:[#allocation19 + $0x40] sm:$0xf]  ;;  %v2634_v15 = vld [vmem:[#allocation19 + $0x48] sm:$0xf]  ;;  %1924 = vmatpush.bf16.msrb.mxu2 %v2647_v50  ;;  %v2599_v51 = vor.u32 %v2859_v26, %v2596_v9 }
 0x463   :  { %v1596_v5 = vpop.f32.mrf.mxu1  ;;  %v2627_v13 = vor.u32 %v2869_v12, %v2626_v11  ;;  %v1639_v52 = vadd.f32 %v3830_v32, %v1358_v47  ;;  %1937 = vmatpush.bf16.msrb.mxu3 %v2651_v8  ;;  %v2635_v28 = vor.u32 %v2870_v19, %v2634_v15  ;;  %v221_v8 = vld [vmem:[#allocation9] sm:$0xff] }
 0x464   :  { %v2590_v35 = vmul.f32 -1.442695, %v1638_v56  ;;  %v1635_v57 = vpop.f32.mrf.mxu0  ;;  %v2631_v56 = vor.u32 %v2867_v16, %v2628_v18  ;;  %v2636_v5 = vld [vmem:[#allocation19 + $0x58] sm:$0xf0] }
 0x465   :  { %1950 = vmatpush.bf16.msra.mxu0 %v2655_v10  ;;  %v2639_v44 = vor.u32 %v2868_v29, %v2636_v5  ;;  %v2863_v57 = vld [vmem:[#allocation19 + $0x24] sm:$0xf]  ;;  %1912 = vmatpush.bf16.msrb.mxu1 %v2627_v13 }
 0x466   :  { %v2994_v3 = vpop.eup %2993  ;;  %2997 = vpow2.f32 %v2590_v35  ;;  %v2865_v35 = vld [vmem:[#allocation19 + $0x2c] sm:$0xf0]  ;;  %1925 = vmatpush.bf16.msrb.mxu2 %v2631_v56  ;;  %v2615_v41 = vor.u32 %v2863_v57, %v2612_v39  ;;  %v1737_v29 = vld [vmem:[%s3910_s11] sm:$0xf] }
 0x467   :  { %v2996_v7 = vpop.eup %2995  ;;  %v3832_v59 = vadd.f32 1.0, %v2994_v3  ;;  %v2611_v32 = vor.u32 %v2865_v35, %v2610_v33  ;;  %1938 = vmatpush.bf16.msrb.mxu3 %v2635_v28  ;;  %v1739_v5 = vperm.slane %v1737_v29, 0  ;;  %v1742_v33 = vperm.slane %v1737_v29, 3  ;;  %v2898_v35 = vld [vmem:[#allocation21 + $0x38] sm:$0xff] }
 0x468   :  { %v3837_v46 = vadd.f32 1.0, %v2996_v7 }
 0x469   :  { %2999 = vrcp.f32 %v3832_v59  ;;  %v1609_v62 = vpop.f32.mrf.mxu2  ;;  %v1654_v34 = vand.u32 2147483647, %v3832_v59  ;;  %v1656_v40 = vand.u32 2147483648, %v3832_v59  ;;  %1951 = vmatpush.bf16.msra.mxu0 %v2639_v44  ;;  %vm1650_vm10 = vweird.f32 %v3832_v59  ;;  %1913 = vmatpush.bf16.msrb.mxu1 %v2611_v32 }
 0x46a   :  { %v1622_v0 = vpop.f32.mrf.mxu3  ;;  %3001 = vrcp.f32 %v3837_v46  ;;  %v2860_v62 = vld [vmem:[#allocation19 + $0xc] sm:$0xf]  ;;  %1926 = vmatpush.bf16.msrb.mxu2 %v2615_v41  ;;  %vm1689_vm2 = vweird.f32 %v3837_v46  ;;  %v1693_v15 = vand.u32 2147483647, %v3837_v46  ;;  %v1740_v32 = vperm.slane %v1737_v29, 1 }
 0x46b   :  { %vm1655_vm12 = vcmp.eq.f32.partialorder %v1654_v34, 8.507059e+37  ;;  %v1657_v36 = vor.u32 1.1754944e-38, %v1656_v40  ;;  %1939 = vmatpush.bf16.msrb.mxu3 %v2619_v20  ;;  %v2607_v2 = vor.u32 %v2860_v62, %v2604_v17  ;;  %v2896_v20 = vld [vmem:[#allocation21 + $0x28] sm:$0xff]  ;;  %v1741_v17 = vperm.slane %v1737_v29, 2 }
 0x46c   :  { %v2998_v49 = vpop.eup %2997  ;;  %vm1694_vm4 = vcmp.eq.f32.partialorder %v1693_v15, 8.507059e+37 }
 0x46d   :  { %v3840_v6 = vadd.f32 1.0, %v2998_v49  ;;  %1952 = vmatpush.bf16.msra.mxu0 %v2623_v58  ;;  %1914 = vmatpush.bf16.msrb.mxu1 %v2595_v61  ;;  %v2893_v61 = vld [vmem:[#allocation21 + $0x10] sm:$0xff] }
 0x46e   :  { %1927 = vmatpush.bf16.msrb.mxu2 %v2599_v51 }
 0x46f   :  { %v3843_v60 = vpop.eup %2999  ;;  %3003 = vrcp.f32 %v3840_v6  ;;  %v1675_v27 = vand.u32 2147483648, %v3840_v6  ;;  %v1673_v50 = vand.u32 2147483647, %v3840_v6  ;;  %vm1669_vm14 = vweird.f32 %v3840_v6 }
 0x470   :  { %v1646_v14 = vmul.f32 %v3843_v60, %v3832_v59  ;;  %3005 = vtanh.f32 %v1639_v52  ;;  %v3851_v3 = vpop.eup %3001  ;;  %vm1651_vm9 = vweird.f32 %v3843_v60  ;;  %v2603_v59 = vor.u32 %v2862_v1, %v2602_v38  ;;  %v2894_v38 = vld [vmem:[#allocation21 + $0x18] sm:$0xff] }
 0x471   :  { %v1685_v0 = vmul.f32 %v3851_v3, %v3837_v46  ;;  %vm1652_vm11 = vmor %vm1650_vm10, %vm1651_vm9  ;;  %1953 = vmatpush.bf16.msra.mxu0 %v2607_v2  ;;  %v1676_v47 = vor.u32 1.1754944e-38, %v1675_v27  ;;  %vm1674_vm0 = vcmp.eq.f32.partialorder %v1673_v50, 8.507059e+37  ;;  %vm1690_vm1 = vweird.f32 %v3851_v3  ;;  %2091 = vmatpush.bf16.msra.mxu1 %v2898_v35  ;;  %v2891_v27 = vld [vmem:[#allocation21] sm:$0xff] }
 0x472   :  { %v1647_v37 = vsub.f32 1.0, %v1646_v14  ;;  %1940 = vmatpush.bf16.msrb.mxu3 %v2603_v59  ;;  %vm1691_vm3 = vmor %vm1689_vm2, %vm1690_vm1 }
 0x473   :  { %v1686_v4 = vsub.f32 1.0, %v1685_v0 }
 0x474   :  { %v1648_v21 = vmul.f32 %v3843_v60, %v1647_v37 }
 0x475   :  { %v3004_v7 = vpop.eup %3003  ;;  %v1687_v12 = vmul.f32 %v3851_v3, %v1686_v4  ;;  %2092 = vmatpush.bf16.msra.mxu1 %v2897_v23 }
 0x476   :  { %v1665_v24 = vmul.f32 %v3004_v7, %v3840_v6  ;;  %v1649_v48 = vadd.f32 %v3843_v60, %v1648_v21  ;;  %v3006_v22 = vpop.eup %3005  ;;  %vm1670_vm13 = vweird.f32 %v3004_v7  ;;  %v1695_v6 = vand.u32 2147483648, %v3837_v46 }
 0x477   :  { %vm1671_vm15 = vmor %vm1669_vm14, %vm1670_vm13  ;;  %v1688_v18 = vadd.f32 %v3851_v3, %v1687_v12 }
 0x478   :  { %v1666_v30 = vsub.f32 1.0, %v1665_v24  ;;  %v1653_v53 = vsel %vm1652_vm11, %v3843_v60, %v1649_v48  ;;  %v1696_v52 = vor.u32 1.1754944e-38, %v1695_v6 }
 0x479   :  { %v1658_v25 = vsel %vm1655_vm12, %v1657_v36, %v1653_v53  ;;  %v1692_v60 = vsel %vm1691_vm3, %v3851_v3, %v1688_v18  ;;  %2093 = vmatpush.bf16.msra.mxu1 %v2896_v20  ;;  %v2892_v36 = vld [vmem:[#allocation21 + $0x8] sm:$0xff] }
 0x47a   :  { %v1667_v49 = vmul.f32 %v3004_v7, %v1666_v30  ;;  %v1700_v31 = vmul.f32 %v3006_v22, %v1658_v25  ;;  %v1697_v14 = vsel %vm1694_vm4, %v1696_v52, %v1692_v60 }
 0x47c   :  { %v1668_v54 = vadd.f32 %v3004_v7, %v1667_v49 }
 0x47d   :  { %2094 = vmatpush.bf16.msra.mxu1 %v2895_v55 }
 0x47e   :  { %v1672_v10 = vsel %vm1671_vm15, %v3004_v7, %v1668_v54 }
 0x47f   :  { %v1677_v11 = vsel %vm1674_vm0, %v1676_v47, %v1672_v10 }
 0x480   :  { %v1699_v13 = vmul.f32 %v1677_v11, %v221_v8 }
 0x481   :  { %2095 = vmatpush.bf16.msra.mxu1 %v2894_v38 }
 0x482   :  { %v3867_v16 = vadd.f32 %v1700_v31, %v1699_v13 }
 0x484   :  { %3007 = vtanh.f32 %v3867_v16 }
 0x485   :  { %2096 = vmatpush.bf16.msra.mxu1 %v2893_v61 }
 0x489   :  { %2097 = vmatpush.bf16.msra.mxu1 %v2892_v36 }
 0x48a   :  { %v3008_v19 = vpop.eup %3007 }
 0x48b   :  { %v1703_v56 = vmul.f32 %v3008_v19, %v1697_v14 }
 0x48d   :  { %v1704_v28 = vpack.c.bf16 %v1703_v56, %v1703_v56  ;;  %2098 = vmatpush.bf16.msra.mxu1 %v2891_v27 }
 0x48f   :  { %1915 = vmatmul.bf16.vlgmr.msrb.gmra.mxu1 %v1704_v28  ;;  %1928 = vmatmul.bf16.vlgmr.msrb.gmra.mxu2 %v1704_v28 }
 0x490   :  { %1941 = vmatmul.bf16.vlgmr.msrb.gmra.mxu3 %v1704_v28  ;;  %1954 = vmatmul.bf16.vlgmr.msra.gmra.mxu0 %v1704_v28 }
 0x50c   :  { %v1916_v46 = vpop.f32.mrf.mxu1 }
 0x50d   :  { %v1917_v34 = vadd.f32 %v1916_v46, %v1739_v5  ;;  %v1955_v44 = vpop.f32.mrf.mxu0 }
 0x50e   :  { %v1956_v57 = vadd.f32 %v1955_v44, %v1742_v33 }
 0x50f   :  { %v2720_v37 = vmul.f32 -1.442695, %v1917_v34 }
 0x510   :  { %v2722_v39 = vmul.f32 -1.442695, %v1956_v57  ;;  %v2926_v57 = vld [vmem:[%s3912_s13] ss:$0 sm:$0xff]  ;;  %s3402_s13 = smov [#allocation25]  }
 0x511   :  { %3009 = vpow2.f32 %v2720_v37  ;;  %s2147_s7 = sshll.u32 %s3402_s13, 4  ;;  %s2148_s7 = int_to_ptr.vmem [resolvable:$true] %s2147_s7 }
 0x512   :  { %3011 = vpow2.f32 %v2722_v39  ;;  %v1929_v40 = vpop.f32.mrf.mxu2 }
 0x513   :  { %v1930_v41 = vadd.f32 %v1929_v40, %v1740_v32  ;;  %v1942_v42 = vpop.f32.mrf.mxu3 }
 0x514   :  { %v1918_v43 = vpop.f32.mrf.mxu1  ;;  %v1943_v59 = vadd.f32 %v1942_v42, %v1741_v17 }
 0x515   :  { %v2721_v3 = vmul.f32 -1.442695, %v1930_v41  ;;  %v1957_v21 = vpop.f32.mrf.mxu0 }
 0x517   :  { %v3010_v45 = vpop.eup %3009  ;;  %3013 = vpow2.f32 %v2721_v3 }
 0x518   :  { %v3012_v63 = vpop.eup %3011  ;;  %v1962_v7 = vadd.f32 1.0, %v3010_v45 }
 0x519   :  { %v3879_v26 = vadd.f32 1.0, %v3012_v63 }
 0x51a   :  { %3015 = vrcp.f32 %v1962_v7  ;;  %v1931_v58 = vpop.f32.mrf.mxu2  ;;  %v1974_v49 = vand.u32 2147483648, %v1962_v7  ;;  %vm1968_vm6 = vweird.f32 %v1962_v7  ;;  %v1972_v31 = vand.u32 2147483647, %v1962_v7 }
 0x51b   :  { %v1944_v9 = vpop.f32.mrf.mxu3  ;;  %3017 = vrcp.f32 %v3879_v26  ;;  %v2013_v29 = vand.u32 2147483648, %v3879_v26  ;;  %vm2007_vm14 = vweird.f32 %v3879_v26  ;;  %v2011_v5 = vand.u32 2147483647, %v3879_v26 }
 0x51c   :  { %v1975_v11 = vor.u32 1.1754944e-38, %v1974_v49  ;;  %vm1973_vm10 = vcmp.eq.f32.partialorder %v1972_v31, 8.507059e+37 }
 0x51d   :  { %v3014_v24 = vpop.eup %3013  ;;  %v2014_v46 = vor.u32 1.1754944e-38, %v2013_v29  ;;  %vm2012_vm0 = vcmp.eq.f32.partialorder %v2011_v5, 8.507059e+37 }
 0x51e   :  { %v1981_v48 = vadd.f32 1.0, %v3014_v24 }
 0x520   :  { %v3016_v1 = vpop.eup %3015  ;;  %3019 = vrcp.f32 %v1981_v48  ;;  %v1993_v4 = vand.u32 2147483648, %v1981_v48  ;;  %v1991_v8 = vand.u32 2147483647, %v1981_v48  ;;  %vm1987_vm9 = vweird.f32 %v1981_v48 }
 0x521   :  { %v1964_v62 = vmul.f32 %v3016_v1, %v1962_v7  ;;  %v3018_v51 = vpop.eup %3017  ;;  %vm1969_vm5 = vweird.f32 %v3016_v1  ;;  %3021 = vtanh.f32 %v1943_v59 }
 0x522   :  { %v2003_v25 = vmul.f32 %v3018_v51, %v3879_v26  ;;  %vm1970_vm7 = vmor %vm1968_vm6, %vm1969_vm5  ;;  %v1994_v13 = vor.u32 1.1754944e-38, %v1993_v4  ;;  %vm1992_vm12 = vcmp.eq.f32.partialorder %v1991_v8, 8.507059e+37  ;;  %vm2008_vm13 = vweird.f32 %v3018_v51 }
 0x523   :  { %v1965_v0 = vsub.f32 1.0, %v1964_v62  ;;  %vm2009_vm15 = vmor %vm2007_vm14, %vm2008_vm13 }
 0x524   :  { %v2004_v10 = vsub.f32 1.0, %v2003_v25 }
 0x525   :  { %v1966_v30 = vmul.f32 %v3016_v1, %v1965_v0 }
 0x526   :  { %v3020_v53 = vpop.eup %3019  ;;  %v2005_v60 = vmul.f32 %v3018_v51, %v2004_v10 }
 0x527   :  { %v1983_v2 = vmul.f32 %v3020_v53, %v1981_v48  ;;  %v1967_v22 = vadd.f32 %v3016_v1, %v1966_v30  ;;  %vm1988_vm8 = vweird.f32 %v3020_v53  ;;  %v3022_v15 = vpop.eup %3021 }
 0x528   :  { %vm1989_vm11 = vmor %vm1987_vm9, %vm1988_vm8  ;;  %v2006_v28 = vadd.f32 %v3018_v51, %v2005_v60 }
 0x529   :  { %v1984_v50 = vsub.f32 1.0, %v1983_v2  ;;  %v1971_v47 = vsel %vm1970_vm7, %v3016_v1, %v1967_v22 }
 0x52a   :  { %v1976_v18 = vsel %vm1973_vm10, %v1975_v11, %v1971_v47  ;;  %v2010_v33 = vsel %vm2009_vm15, %v3018_v51, %v2006_v28 }
 0x52b   :  { %v1985_v54 = vmul.f32 %v3020_v53, %v1984_v50  ;;  %v2018_v14 = vmul.f32 %v3022_v15, %v1976_v18  ;;  %v2015_v44 = vsel %vm2012_vm0, %v2014_v46, %v2010_v33 }
 0x52d   :  { %v1986_v12 = vadd.f32 %v3020_v53, %v1985_v54 }
 0x52f   :  { %v1990_v6 = vsel %vm1989_vm11, %v3020_v53, %v1986_v12 }
 0x530   :  { %v1995_v52 = vsel %vm1992_vm12, %v1994_v13, %v1990_v6 }
 0x531   :  { %v2017_v19 = vmul.f32 %v1995_v52, %v3867_v16 }
 0x533   :  { %v2019_v56 = vadd.f32 %v2018_v14, %v2017_v19 }
 0x535   :  { %3023 = vtanh.f32 %v2019_v56  ;;  %2119 = vst [vmem:[#allocation25] sm:$0xff] %v2019_v56 }
 0x53b   :  { %v3024_v34 = vpop.eup %3023 }
 0x53c   :  { %v2021_v35 = vmul.f32 %v3024_v34, %v2015_v44 }
 0x53e   :  { %v2022_v16 = vpack.c.bf16 %v2021_v35, %v2021_v35  ;;  %2118 = vst [vmem:[#allocation23] sm:$0xff] %v2021_v35 }
 0x53f   :  { %2141 = dma.vmem_to_hbm [thread:$0]  %s2137_s20, 128, %s2139_s19, [#allocation24]  }
 0x540   :  { %2099 = vmatmul.bf16.vlgmr.msra.gmra.mxu1 %v2022_v16  ;;  %2152 = dma.vmem_to_hbm [thread:$0]  %s2148_s7, 128, %s2150_s21, [#allocation24]  }
 0x5bd   :  { %v2100_v37 = vpop.f32.mrf.mxu1 }
 0x5be   :  { %v2101_v32 = vadd.f32 %v2926_v57, %v2100_v37 }
 0x5c0   :  { %2104 = vmax.xlane.f32.xlu2 %v2101_v32 }
 0x5c5   :  { %v2102_v39 = vpop.f32.mrf.mxu1 }
 0x633   :  { %v2105_v23 = vpop.xlane.xlu2 %2104 }
 0x634   :  { %v2106_v40 = vsub.f32 %v2101_v32, %v2105_v23 }
 0x636   :  { %v2107_v41 = vmul.f32 1.442695, %v2106_v40 }
 0x638   :  { %3025 = vpow2.f32 %v2107_v41 }
 0x63e   :  { %v3026_v42 = vpop.eup %3025 }
 0x63f   :  { %2109 = vadd.xlane.f32.xlu1 %v3026_v42 }
 0x6b2   :  { %v2110_v43 = vpop.xlane.xlu1 %2109 }
 0x6b3   :  { %3027 = vlog2.f32 %v2110_v43 }
 0x6b9   :  { %v3028_v3 = vpop.eup %3027 }
 0x6ba   :  { %v2112_v21 = vmul.f32 0.6931472, %v3028_v3 }
 0x6bc   :  { %v2113_v20 = vadd.f32 %v2112_v21, %v2105_v23 }
 0x6be   :  { %v2114_v45 = vsub.f32 %v2101_v32, %v2113_v20 }
 0x6c0   :  { %2115 = vst [vmem:[#allocation22] sm:$0xff] %v2114_v45 }
 0x6c1   :  { %2130 = dma.vmem_to_hbm [thread:$0]  %s2126_s4, 128, %s2128_s23, [#allocation6]  }
 0x6c2   :  { %3377 = dma.done.wait [#allocation6], 128  }
 0x6c3   :  { %3378 = vsyncadd [#allocation6], 4294967168 }
 0x6c4   :  { %3379 = dma.done.wait [#allocation24], 256  }
 0x6c5   :  { %3380 = vsyncadd [#allocation24], 4294967040 }
 0x6c6   :  { %2165 = vsyncpa [#allocation5], 1 }
 0x6c7   :  { %2166 = vsyncpa [#allocation8], 1 }
 0x6c8   :  { %2167 = vsyncpa [#allocation11], 1 }
 0x6c9   :  { %2168 = vsyncpa [#allocation14], 1 }
 0x6ca   :  { %2169 = vsyncpa [#allocation17], 1 }
 0x6cb   :  { %2170 = vsyncpa [#allocation20], 1 }
 0x6cc   :  { %2171 = vsyncpa [#allocation6], 1 }
 0x6cd   :  { %2172 = vsyncpa [#allocation24], 1 }

</bundles_post_ra>
